<compile_context>
chip_gen: v6e
topology: v6e:2x2x1
jax: 0.10.0
libtpu: 0.0.40
codegen_flags: <defaults>
</compile_context>

<pallas_src>
import jax
import jax.numpy as jnp
from jax.experimental import pallas as pl
from jax.experimental.pallas import tpu as pltpu


# ----------------------------------------------------------------------------
# Config (mirrors `args` of the PyTorch module, small synthetic sizes)
# ----------------------------------------------------------------------------
X_DIM = 4
CHANNELS = 2
INPUT_SIZE = X_DIM * CHANNELS          # 8
ENC_H_DIM = 32
N_LAYERS = 2
BIDIRECTIONAL = True
DIRECTIONS = 2 if BIDIRECTIONAL else 1
Z_DIM = 16
BATCH = 2
SEQ_LEN = 8


# ----------------------------------------------------------------------------
# Fused Pallas kernel: 2-layer bidirectional LSTM + VAE head
# ----------------------------------------------------------------------------
def _encoder_kernel(
    x_ref,                                   # (T*Bp, Din0)
    w0f_ref, w0b_ref, whh0_ref, b0_ref,      # layer0: padded W_ih (f/b), block-diag W_hh, bias
    w1f_ref, w1b_ref, whh1_ref, b1_ref,      # layer1: same layout (input dim = 2H)
    whead_ref, bhead_ref,                    # (4H_total, 2Z), (1, 2Z)
    n_ref,                                   # (Bp, Z) reparameterization noise
    out_ref,                                 # (Bp, 3Z) packed [z | mu | sigma_hat]
    h0_s,                                    # VMEM (T*Bp, 2H): layer-0 hidden seq (canonical time)
    gxf_s, gxb_s,                            # VMEM (T*Bp, 8H): hoisted input projections
):
    f32 = jnp.float32
    Bp, Z = n_ref.shape
    H2 = whh0_ref.shape[0]                   # 2H (fwd|bwd state slab width)
    H = H2 // 2
    T = x_ref.shape[0] // Bp
    G6 = 6 * H                               # width of the contiguous sigmoid block (i|f|o)

    def run_layer(whh_ref, b_ref, store_h0):
        """Direction-batched LSTM recurrence.

        Loop step s processes fwd-direction time s and bwd-direction time
        T-1-s simultaneously.  Gate columns are [I(2H) | F(2H) | O(2H) | G(2H)]
        with fwd/bwd halves adjacent inside each gate, so one sigmoid over the
        first 6H columns and one tanh over the last 2H columns covers all gates.
        Returns the final (Bp, 2H) slab [h_fwd_final | h_bwd_final].
        """
        w_hh = whh_ref[...]                  # (2H, 8H) block-diagonal, hoisted
        bias = b_ref[...]                    # (1, 8H)
        h = jnp.zeros((Bp, H2), f32)
        c = jnp.zeros((Bp, H2), f32)
        for s in range(T):                   # fully unrolled (static T)
            r = T - 1 - s                    # bwd-direction time index
            g = (gxf_s[s * Bp:(s + 1) * Bp, :]
                 + gxb_s[r * Bp:(r + 1) * Bp, :]
                 + jnp.dot(h, w_hh, preferred_element_type=f32)
                 + bias)                     # (Bp, 8H)
            sg = jax.nn.sigmoid(g[:, :G6])   # i|f|o gates in one EUP region
            gg = jnp.tanh(g[:, G6:])         # g gate
            i = sg[:, 0 * H2:1 * H2]
            f = sg[:, 1 * H2:2 * H2]
            o = sg[:, 2 * H2:3 * H2]
            c = f * c + i * gg
            h = o * jnp.tanh(c)
            if store_h0:
                # canonical-time layout: fwd half at row-block s, bwd at T-1-s
                h0_s[s * Bp:(s + 1) * Bp, 0:H] = h[:, 0:H]
                h0_s[r * Bp:(r + 1) * Bp, H:H2] = h[:, H:H2]
        return h

    # ---- layer 0: input projection hoisted to 2 bulk matmuls (off serial path)
    x = x_ref[...]                           # (T*Bp, Din0)
    gxf_s[...] = jnp.dot(x, w0f_ref[...], preferred_element_type=f32)
    gxb_s[...] = jnp.dot(x, w0b_ref[...], preferred_element_type=f32)
    hfin0 = run_layer(whh0_ref, b0_ref, store_h0=True)   # (Bp, 2H) = [h0f | h0b]

    # ---- layer 1: input projection over the whole stored layer-0 sequence ----
    h0_all = h0_s[...]                       # (T*Bp, 2H), canonical time order
    gxf_s[...] = jnp.dot(h0_all, w1f_ref[...], preferred_element_type=f32)
    gxb_s[...] = jnp.dot(h0_all, w1b_ref[...], preferred_element_type=f32)
    hfin1 = run_layer(whh1_ref, b1_ref, store_h0=False)  # (Bp, 2H) = [h1f | h1b]

    # ---- VAE head: single (Bp, 4H) @ (4H, 2Z) matmul for mu and sigma_hat ----
    hcat = jnp.concatenate([hfin0, hfin1], axis=1)        # (Bp, 128) = [l0f l0b l1f l1b]
    head = (jnp.dot(hcat, whead_ref[...], preferred_element_type=f32)
            + bhead_ref[...])                             # (Bp, 2Z)
    mu = head[:, :Z]
    sh = head[:, Z:]
    z = mu + jnp.exp(sh * 0.5) * n_ref[...]
    out_ref[...] = jnp.concatenate([z, mu, sh], axis=1)   # (Bp, 3Z) single store


# ----------------------------------------------------------------------------
# One-time parameter preprocessing (gate reorder, direction interleave, splits)
# ----------------------------------------------------------------------------
def prepare_params(params):
    assert N_LAYERS == 2 and DIRECTIONS == 2
    H = ENC_H_DIM
    H2 = 2 * H
    f32 = jnp.float32

    def place(w_t, direction):
        """Map (rows, 4H) with PyTorch gate cols [i f g o] into (rows, 8H) in the
        batched layout [I(2H) F(2H) O(2H) G(2H)], filling the fwd (direction=0)
        or bwd (direction=1) half of each gate block; other columns are zero."""
        rows = w_t.shape[0]
        out = jnp.zeros((rows, 8 * H), f32)
        # target gate order (i, f, o, g); source order is (i, f, g, o)
        gates = (w_t[:, 0:H], w_t[:, H:2 * H], w_t[:, 3 * H:4 * H], w_t[:, 2 * H:3 * H])
        off = 0 if direction == 0 else H
        for k, gw in enumerate(gates):
            out = out.at[:, k * H2 + off: k * H2 + off + H].set(gw)
        return out

    weights = []
    for layer in range(N_LAYERS):
        wf_ih, wf_hh, bf_ih, bf_hh = params["lstm"][(layer, 0)]
        wb_ih, wb_hh, bb_ih, bb_hh = params["lstm"][(layer, 1)]
        w_in_f = place(jnp.asarray(wf_ih.T, f32), 0)      # (Din, 8H), bwd cols zero
        w_in_b = place(jnp.asarray(wb_ih.T, f32), 1)      # (Din, 8H), fwd cols zero
        whh_bd = jnp.concatenate(
            [place(jnp.asarray(wf_hh.T, f32), 0),         # rows 0:H  -> h_fwd
             place(jnp.asarray(wb_hh.T, f32), 1)],        # rows H:2H -> h_bwd
            axis=0)                                       # (2H, 8H) block-diagonal
        bias = (place(jnp.asarray((bf_ih + bf_hh).reshape(1, -1), f32), 0)
                + place(jnp.asarray((bb_ih + bb_hh).reshape(1, -1), f32), 1))
        weights += [w_in_f, w_in_b, whh_bd, bias]

    # VAE head: stack mu / sigma along the output dimension -> one matmul
    w_head = jnp.concatenate([jnp.asarray(params["w_mu"].T, f32),
                              jnp.asarray(params["w_sigma"].T, f32)], axis=1)  # (4H_tot, 2Z)
    b_head = jnp.concatenate([jnp.asarray(params["b_mu"], f32),
                              jnp.asarray(params["b_sigma"], f32)]).reshape(1, -1)
    weights += [w_head, b_head]
    return tuple(weights)


# ----------------------------------------------------------------------------
# Jitted forward wrapper (pad batch to sublane width, single pallas_call)
# ----------------------------------------------------------------------------
@jax.jit
def sketch_rnn_encoder_forward(x, kernel_weights, noise):
    """x: (T, B, input_size). Returns (z, mu, sigma_hat), each (B, z_dim)."""
    T, B, Din = x.shape
    Z = noise.shape[-1]
    Bp = ((B + 7) // 8) * 8                        # pad batch to sublane width
    xp = jnp.pad(x.astype(jnp.float32), ((0, 0), (0, Bp - B), (0, 0)))
    x_flat = xp.reshape(T * Bp, Din)
    noise_p = jnp.pad(noise.astype(jnp.float32), ((0, Bp - B), (0, 0)))

    n_inputs = 2 + len(kernel_weights)
    vmem = pltpu.MemorySpace.VMEM
    out = pl.pallas_call(
        _encoder_kernel,
        out_shape=jax.ShapeDtypeStruct((Bp, 3 * Z), jnp.float32),
        in_specs=[pl.BlockSpec(memory_space=vmem)] * n_inputs,
        out_specs=pl.BlockSpec(memory_space=vmem),
        scratch_shapes=[
            pltpu.VMEM((T * Bp, 2 * ENC_H_DIM), jnp.float32),   # layer-0 hidden seq
            pltpu.VMEM((T * Bp, 8 * ENC_H_DIM), jnp.float32),   # gx fwd (reused layer 0/1)
            pltpu.VMEM((T * Bp, 8 * ENC_H_DIM), jnp.float32),   # gx bwd (reused layer 0/1)
        ],
        compiler_params=pltpu.CompilerParams(vmem_limit_bytes=16 * 1024 * 1024),
    )(x_flat, *kernel_weights, noise_p)

    z = out[:B, 0 * Z:1 * Z]
    mu = out[:B, 1 * Z:2 * Z]
    sh = out[:B, 2 * Z:3 * Z]
    return z, mu, sh


# ----------------------------------------------------------------------------
# Pure-JAX reference (for correctness check of the Pallas kernel)
# ----------------------------------------------------------------------------
def _ref_lstm_layer_dir(x_seq, w_ih, w_hh, b_ih, b_hh):
    T, B, _ = x_seq.shape
    H = w_hh.shape[1]
    h = jnp.zeros((B, H), jnp.float32)
    c = jnp.zeros((B, H), jnp.float32)
    outs = []
    for t in range(T):
        gates = x_seq[t] @ w_ih.T + h @ w_hh.T + b_ih + b_hh
        i = jax.nn.sigmoid(gates[:, 0 * H:1 * H])
        f = jax.nn.sigmoid(gates[:, 1 * H:2 * H])
        g = jnp.tanh(gates[:, 2 * H:3 * H])
        o = jax.nn.sigmoid(gates[:, 3 * H:4 * H])
        c = f * c + i * g
        h = o * jnp.tanh(c)
        outs.append(h)
    return jnp.stack(outs, axis=0)


def _ref_forward(x, params, noise):
    layer_input = x
    finals = []
    for layer in range(N_LAYERS):
        dir_outs = []
        for d in range(DIRECTIONS):
            w_ih, w_hh, b_ih, b_hh = params["lstm"][(layer, d)]
            xin = layer_input if d == 0 else layer_input[::-1]
            h_seq = _ref_lstm_layer_dir(xin, w_ih, w_hh, b_ih, b_hh)
            if d == 1:
                h_seq = h_seq[::-1]
            dir_outs.append(h_seq)
            finals.append(h_seq[-1] if d == 0 else h_seq[0])
        layer_input = (jnp.concatenate(dir_outs, axis=-1)
                       if DIRECTIONS == 2 else dir_outs[0])
    hidden_cat = jnp.concatenate(finals, axis=-1)
    mu = hidden_cat @ params["w_mu"].T + params["b_mu"]
    sigma_hat = hidden_cat @ params["w_sigma"].T + params["b_sigma"]
    z = mu + jnp.exp(sigma_hat / 2) * noise
    return z, mu, sigma_hat


# ----------------------------------------------------------------------------
# Deterministic parameter init (shapes follow nn.LSTM / nn.Linear)
# ----------------------------------------------------------------------------
def init_params(key):
    params = {"lstm": {}}
    k_scale = 1.0 / jnp.sqrt(ENC_H_DIM)
    for layer in range(N_LAYERS):
        din = INPUT_SIZE if layer == 0 else ENC_H_DIM * DIRECTIONS
        for d in range(DIRECTIONS):
            key, k1, k2, k3, k4 = jax.random.split(key, 5)
            w_ih = jax.random.uniform(k1, (4 * ENC_H_DIM, din),
                                      minval=-k_scale, maxval=k_scale)
            w_hh = jax.random.uniform(k2, (4 * ENC_H_DIM, ENC_H_DIM),
                                      minval=-k_scale, maxval=k_scale)
            b_ih = jax.random.uniform(k3, (4 * ENC_H_DIM,),
                                      minval=-k_scale, maxval=k_scale)
            b_hh = jax.random.uniform(k4, (4 * ENC_H_DIM,),
                                      minval=-k_scale, maxval=k_scale)
            params["lstm"][(layer, d)] = (w_ih, w_hh, b_ih, b_hh)

    feat = N_LAYERS * DIRECTIONS * ENC_H_DIM
    lin_scale = 1.0 / jnp.sqrt(feat)
    key, k1, k2, k3, k4 = jax.random.split(key, 5)
    params["w_mu"] = jax.random.uniform(k1, (Z_DIM, feat),
                                        minval=-lin_scale, maxval=lin_scale)
    params["b_mu"] = jax.random.uniform(k2, (Z_DIM,),
                                        minval=-lin_scale, maxval=lin_scale)
    params["w_sigma"] = jax.random.uniform(k3, (Z_DIM, feat),
                                           minval=-lin_scale, maxval=lin_scale)
    params["b_sigma"] = jax.random.uniform(k4, (Z_DIM,),
                                           minval=-lin_scale, maxval=lin_scale)
    return params


# ----------------------------------------------------------------------------
# Main
# ----------------------------------------------------------------------------
if __name__ == "__main__":
    root = jax.random.PRNGKey(0)
    k_par, k_x, k_n = jax.random.split(root, 3)

    params = init_params(k_par)
    kernel_weights = prepare_params(params)        # one-time weight prep
    x = jax.random.normal(k_x, (SEQ_LEN, BATCH, INPUT_SIZE), dtype=jnp.float32)
    noise = jax.random.normal(k_n, (BATCH, Z_DIM), dtype=jnp.float32)

    z, mu, sigma_hat = sketch_rnn_encoder_forward(x, kernel_weights, noise)
    jax.block_until_ready((z, mu, sigma_hat))

    # sanity check vs pure-JAX reference
    z_r, mu_r, sh_r = _ref_forward(x, params, noise)
    assert z.shape == (BATCH, Z_DIM)
    assert mu.shape == (BATCH, Z_DIM)
    assert sigma_hat.shape == (BATCH, Z_DIM)
    assert jnp.allclose(mu, mu_r, atol=2e-2, rtol=2e-2)
    assert jnp.allclose(sigma_hat, sh_r, atol=2e-2, rtol=2e-2)
    assert jnp.allclose(z, z_r, atol=2e-2, rtol=2e-2)

    print("KERNEL_OK")
</pallas_src>

<mosaic_0001>
module attributes {stable_mosaic.version = 11 : i64} {
  func.func @_encoder_kernel(%arg0: memref<64x8xf32, #tpu.memory_space<vmem>>, %arg1: memref<8x256xf32, #tpu.memory_space<vmem>>, %arg2: memref<8x256xf32, #tpu.memory_space<vmem>>, %arg3: memref<64x256xf32, #tpu.memory_space<vmem>>, %arg4: memref<1x256xf32, #tpu.memory_space<vmem>>, %arg5: memref<64x256xf32, #tpu.memory_space<vmem>>, %arg6: memref<64x256xf32, #tpu.memory_space<vmem>>, %arg7: memref<64x256xf32, #tpu.memory_space<vmem>>, %arg8: memref<1x256xf32, #tpu.memory_space<vmem>>, %arg9: memref<128x32xf32, #tpu.memory_space<vmem>>, %arg10: memref<1x32xf32, #tpu.memory_space<vmem>>, %arg11: memref<8x16xf32, #tpu.memory_space<vmem>>, %arg12: memref<8x48xf32, #tpu.memory_space<vmem>>, %arg13: memref<64x64xf32, #tpu.memory_space<vmem>>, %arg14: memref<64x256xf32, #tpu.memory_space<vmem>>, %arg15: memref<64x256xf32, #tpu.memory_space<vmem>>) attributes {dimension_semantics = [], scalar_prefetch = 0 : i64, scratch_operands = 3 : i64, tpu.core_type = #tpu.core_type<tc>} {
    %c0 = arith.constant 0 : index
    %c0_0 = arith.constant 0 : index
    %0 = vector.load %arg0[%c0, %c0_0] : memref<64x8xf32, #tpu.memory_space<vmem>>, vector<64x8xf32>
    %c0_1 = arith.constant 0 : index
    %c0_2 = arith.constant 0 : index
    %1 = vector.load %arg1[%c0_1, %c0_2] : memref<8x256xf32, #tpu.memory_space<vmem>>, vector<8x256xf32>
    %cst = arith.constant dense<0.000000e+00> : vector<64x256xf32>
    %2 = tpu.matmul %0, %1, %cst {dimension_numbers = #tpu.dot_dimension_numbers<[1], [0], [0], [1], [0, 0, 1, 1], [], []>} : vector<64x8xf32>, vector<8x256xf32>, vector<64x256xf32> -> vector<64x256xf32>
    %c0_3 = arith.constant 0 : index
    %c0_4 = arith.constant 0 : index
    %3 = vector.load %arg14[%c0_3, %c0_4] : memref<64x256xf32, #tpu.memory_space<vmem>>, vector<64x256xf32>
    tpu.vector_store %arg14[%c0_3, %c0_4], %2 {strides = array<i32>} : memref<64x256xf32, #tpu.memory_space<vmem>>, vector<64x256xf32>,
    %c0_5 = arith.constant 0 : index
    %c0_6 = arith.constant 0 : index
    %4 = vector.load %arg2[%c0_5, %c0_6] : memref<8x256xf32, #tpu.memory_space<vmem>>, vector<8x256xf32>
    %cst_7 = arith.constant dense<0.000000e+00> : vector<64x256xf32>
    %5 = tpu.matmul %0, %4, %cst_7 {dimension_numbers = #tpu.dot_dimension_numbers<[1], [0], [0], [1], [0, 0, 1, 1], [], []>} : vector<64x8xf32>, vector<8x256xf32>, vector<64x256xf32> -> vector<64x256xf32>
    %c0_8 = arith.constant 0 : index
    %c0_9 = arith.constant 0 : index
    %6 = vector.load %arg15[%c0_8, %c0_9] : memref<64x256xf32, #tpu.memory_space<vmem>>, vector<64x256xf32>
    tpu.vector_store %arg15[%c0_8, %c0_9], %5 {strides = array<i32>} : memref<64x256xf32, #tpu.memory_space<vmem>>, vector<64x256xf32>,
    %c0_10 = arith.constant 0 : index
    %c0_11 = arith.constant 0 : index
    %7 = vector.load %arg3[%c0_10, %c0_11] : memref<64x256xf32, #tpu.memory_space<vmem>>, vector<64x256xf32>
    %c0_12 = arith.constant 0 : index
    %c0_13 = arith.constant 0 : index
    %8 = vector.load %arg4[%c0_12, %c0_13] : memref<1x256xf32, #tpu.memory_space<vmem>>, vector<1x256xf32>
    %cst_14 = arith.constant 0.000000e+00 : f32
    %9 = vector.broadcast %cst_14 : f32 to vector<8x64xf32>
    %cst_15 = arith.constant 0.000000e+00 : f32
    %10 = vector.broadcast %cst_15 : f32 to vector<8x64xf32>
    %c0_16 = arith.constant 0 : index
    %c0_17 = arith.constant 0 : index
    %11 = vector.load %arg14[%c0_16, %c0_17] : memref<64x256xf32, #tpu.memory_space<vmem>>, vector<8x256xf32>
    %c56 = arith.constant 56 : index
    %c0_18 = arith.constant 0 : index
    %12 = vector.load %arg15[%c56, %c0_18] : memref<64x256xf32, #tpu.memory_space<vmem>>, vector<8x256xf32>
    %13 = arith.addf %11, %12 : vector<8x256xf32>
    %cst_19 = arith.constant dense<0.000000e+00> : vector<8x256xf32>
    %14 = tpu.matmul %9, %7, %cst_19 {dimension_numbers = #tpu.dot_dimension_numbers<[1], [0], [0], [1], [0, 0, 1, 1], [], []>} : vector<8x64xf32>, vector<64x256xf32>, vector<8x256xf32> -> vector<8x256xf32>
    %15 = arith.addf %13, %14 : vector<8x256xf32>
    %16 = vector.broadcast %8 : vector<1x256xf32> to vector<8x256xf32>
    %17 = arith.addf %15, %16 : vector<8x256xf32>
    %18 = vector.extract_strided_slice %17 {offsets = [0, 0], sizes = [8, 192], strides = [1, 1]} : vector<8x256xf32> to vector<8x192xf32>
    %19 = arith.negf %18 : vector<8x192xf32>
    %20 = math.exp %19 : vector<8x192xf32>
    %cst_20 = arith.constant 1.000000e+00 : f32
    %21 = vector.broadcast %cst_20 : f32 to vector<8x192xf32>
    %22 = arith.addf %21, %20 : vector<8x192xf32>
    %23 = arith.divf %21, %22 : vector<8x192xf32>
    %24 = vector.extract_strided_slice %17 {offsets = [0, 192], sizes = [8, 64], strides = [1, 1]} : vector<8x256xf32> to vector<8x64xf32>
    %25 = math.tanh %24 : vector<8x64xf32>
    %26 = vector.extract_strided_slice %23 {offsets = [0, 0], sizes = [8, 64], strides = [1, 1]} : vector<8x192xf32> to vector<8x64xf32>
    %27 = vector.extract_strided_slice %23 {offsets = [0, 64], sizes = [8, 64], strides = [1, 1]} : vector<8x192xf32> to vector<8x64xf32>
    %28 = vector.extract_strided_slice %23 {offsets = [0, 128], sizes = [8, 64], strides = [1, 1]} : vector<8x192xf32> to vector<8x64xf32>
    %29 = arith.mulf %27, %10 : vector<8x64xf32>
    %30 = arith.mulf %26, %25 : vector<8x64xf32>
    %31 = arith.addf %29, %30 : vector<8x64xf32>
    %32 = math.tanh %31 : vector<8x64xf32>
    %33 = arith.mulf %28, %32 : vector<8x64xf32>
    %34 = vector.extract_strided_slice %33 {offsets = [0, 0], sizes = [8, 32], strides = [1, 1]} : vector<8x64xf32> to vector<8x32xf32>
    %c0_21 = arith.constant 0 : index
    %c0_22 = arith.constant 0 : index
    %35 = vector.load %arg13[%c0_21, %c0_22] : memref<64x64xf32, #tpu.memory_space<vmem>>, vector<8x32xf32>
    tpu.vector_store %arg13[%c0_21, %c0_22], %34 {strides = array<i32>} : memref<64x64xf32, #tpu.memory_space<vmem>>, vector<8x32xf32>,
    %36 = vector.extract_strided_slice %33 {offsets = [0, 32], sizes = [8, 32], strides = [1, 1]} : vector<8x64xf32> to vector<8x32xf32>
    %c56_23 = arith.constant 56 : index
    %c32 = arith.constant 32 : index
    %37 = vector.load %arg13[%c56_23, %c32] : memref<64x64xf32, #tpu.memory_space<vmem>>, vector<8x32xf32>
    tpu.vector_store %arg13[%c56_23, %c32], %36 {strides = array<i32>} : memref<64x64xf32, #tpu.memory_space<vmem>>, vector<8x32xf32>,
    %c8 = arith.constant 8 : index
    %c0_24 = arith.constant 0 : index
    %38 = vector.load %arg14[%c8, %c0_24] : memref<64x256xf32, #tpu.memory_space<vmem>>, vector<8x256xf32>
    %c48 = arith.constant 48 : index
    %c0_25 = arith.constant 0 : index
    %39 = vector.load %arg15[%c48, %c0_25] : memref<64x256xf32, #tpu.memory_space<vmem>>, vector<8x256xf32>
    %40 = arith.addf %38, %39 : vector<8x256xf32>
    %cst_26 = arith.constant dense<0.000000e+00> : vector<8x256xf32>
    %41 = tpu.matmul %33, %7, %cst_26 {dimension_numbers = #tpu.dot_dimension_numbers<[1], [0], [0], [1], [0, 0, 1, 1], [], []>} : vector<8x64xf32>, vector<64x256xf32>, vector<8x256xf32> -> vector<8x256xf32>
    %42 = arith.addf %40, %41 : vector<8x256xf32>
    %43 = vector.broadcast %8 : vector<1x256xf32> to vector<8x256xf32>
    %44 = arith.addf %42, %43 : vector<8x256xf32>
    %45 = vector.extract_strided_slice %44 {offsets = [0, 0], sizes = [8, 192], strides = [1, 1]} : vector<8x256xf32> to vector<8x192xf32>
    %46 = arith.negf %45 : vector<8x192xf32>
    %47 = math.exp %46 : vector<8x192xf32>
    %cst_27 = arith.constant 1.000000e+00 : f32
    %48 = vector.broadcast %cst_27 : f32 to vector<8x192xf32>
    %49 = arith.addf %48, %47 : vector<8x192xf32>
    %50 = arith.divf %48, %49 : vector<8x192xf32>
    %51 = vector.extract_strided_slice %44 {offsets = [0, 192], sizes = [8, 64], strides = [1, 1]} : vector<8x256xf32> to vector<8x64xf32>
    %52 = math.tanh %51 : vector<8x64xf32>
    %53 = vector.extract_strided_slice %50 {offsets = [0, 0], sizes = [8, 64], strides = [1, 1]} : vector<8x192xf32> to vector<8x64xf32>
    %54 = vector.extract_strided_slice %50 {offsets = [0, 64], sizes = [8, 64], strides = [1, 1]} : vector<8x192xf32> to vector<8x64xf32>
    %55 = vector.extract_strided_slice %50 {offsets = [0, 128], sizes = [8, 64], strides = [1, 1]} : vector<8x192xf32> to vector<8x64xf32>
    %56 = arith.mulf %54, %31 : vector<8x64xf32>
    %57 = arith.mulf %53, %52 : vector<8x64xf32>
    %58 = arith.addf %56, %57 : vector<8x64xf32>
    %59 = math.tanh %58 : vector<8x64xf32>
    %60 = arith.mulf %55, %59 : vector<8x64xf32>
    %61 = vector.extract_strided_slice %60 {offsets = [0, 0], sizes = [8, 32], strides = [1, 1]} : vector<8x64xf32> to vector<8x32xf32>
    %c8_28 = arith.constant 8 : index
    %c0_29 = arith.constant 0 : index
    %62 = vector.load %arg13[%c8_28, %c0_29] : memref<64x64xf32, #tpu.memory_space<vmem>>, vector<8x32xf32>
    tpu.vector_store %arg13[%c8_28, %c0_29], %61 {strides = array<i32>} : memref<64x64xf32, #tpu.memory_space<vmem>>, vector<8x32xf32>,
    %63 = vector.extract_strided_slice %60 {offsets = [0, 32], sizes = [8, 32], strides = [1, 1]} : vector<8x64xf32> to vector<8x32xf32>
    %c48_30 = arith.constant 48 : index
    %c32_31 = arith.constant 32 : index
    %64 = vector.load %arg13[%c48_30, %c32_31] : memref<64x64xf32, #tpu.memory_space<vmem>>, vector<8x32xf32>
    tpu.vector_store %arg13[%c48_30, %c32_31], %63 {strides = array<i32>} : memref<64x64xf32, #tpu.memory_space<vmem>>, vector<8x32xf32>,
    %c16 = arith.constant 16 : index
    %c0_32 = arith.constant 0 : index
    %65 = vector.load %arg14[%c16, %c0_32] : memref<64x256xf32, #tpu.memory_space<vmem>>, vector<8x256xf32>
    %c40 = arith.constant 40 : index
    %c0_33 = arith.constant 0 : index
    %66 = vector.load %arg15[%c40, %c0_33] : memref<64x256xf32, #tpu.memory_space<vmem>>, vector<8x256xf32>
    %67 = arith.addf %65, %66 : vector<8x256xf32>
    %cst_34 = arith.constant dense<0.000000e+00> : vector<8x256xf32>
    %68 = tpu.matmul %60, %7, %cst_34 {dimension_numbers = #tpu.dot_dimension_numbers<[1], [0], [0], [1], [0, 0, 1, 1], [], []>} : vector<8x64xf32>, vector<64x256xf32>, vector<8x256xf32> -> vector<8x256xf32>
    %69 = arith.addf %67, %68 : vector<8x256xf32>
    %70 = vector.broadcast %8 : vector<1x256xf32> to vector<8x256xf32>
    %71 = arith.addf %69, %70 : vector<8x256xf32>
    %72 = vector.extract_strided_slice %71 {offsets = [0, 0], sizes = [8, 192], strides = [1, 1]} : vector<8x256xf32> to vector<8x192xf32>
    %73 = arith.negf %72 : vector<8x192xf32>
    %74 = math.exp %73 : vector<8x192xf32>
    %cst_35 = arith.constant 1.000000e+00 : f32
    %75 = vector.broadcast %cst_35 : f32 to vector<8x192xf32>
    %76 = arith.addf %75, %74 : vector<8x192xf32>
    %77 = arith.divf %75, %76 : vector<8x192xf32>
    %78 = vector.extract_strided_slice %71 {offsets = [0, 192], sizes = [8, 64], strides = [1, 1]} : vector<8x256xf32> to vector<8x64xf32>
    %79 = math.tanh %78 : vector<8x64xf32>
    %80 = vector.extract_strided_slice %77 {offsets = [0, 0], sizes = [8, 64], strides = [1, 1]} : vector<8x192xf32> to vector<8x64xf32>
    %81 = vector.extract_strided_slice %77 {offsets = [0, 64], sizes = [8, 64], strides = [1, 1]} : vector<8x192xf32> to vector<8x64xf32>
    %82 = vector.extract_strided_slice %77 {offsets = [0, 128], sizes = [8, 64], strides = [1, 1]} : vector<8x192xf32> to vector<8x64xf32>
    %83 = arith.mulf %81, %58 : vector<8x64xf32>
    %84 = arith.mulf %80, %79 : vector<8x64xf32>
    %85 = arith.addf %83, %84 : vector<8x64xf32>
    %86 = math.tanh %85 : vector<8x64xf32>
    %87 = arith.mulf %82, %86 : vector<8x64xf32>
    %88 = vector.extract_strided_slice %87 {offsets = [0, 0], sizes = [8, 32], strides = [1, 1]} : vector<8x64xf32> to vector<8x32xf32>
    %c16_36 = arith.constant 16 : index
    %c0_37 = arith.constant 0 : index
    %89 = vector.load %arg13[%c16_36, %c0_37] : memref<64x64xf32, #tpu.memory_space<vmem>>, vector<8x32xf32>
    tpu.vector_store %arg13[%c16_36, %c0_37], %88 {strides = array<i32>} : memref<64x64xf32, #tpu.memory_space<vmem>>, vector<8x32xf32>,
    %90 = vector.extract_strided_slice %87 {offsets = [0, 32], sizes = [8, 32], strides = [1, 1]} : vector<8x64xf32> to vector<8x32xf32>
    %c40_38 = arith.constant 40 : index
    %c32_39 = arith.constant 32 : index
    %91 = vector.load %arg13[%c40_38, %c32_39] : memref<64x64xf32, #tpu.memory_space<vmem>>, vector<8x32xf32>
    tpu.vector_store %arg13[%c40_38, %c32_39], %90 {strides = array<i32>} : memref<64x64xf32, #tpu.memory_space<vmem>>, vector<8x32xf32>,
    %c24 = arith.constant 24 : index
    %c0_40 = arith.constant 0 : index
    %92 = vector.load %arg14[%c24, %c0_40] : memref<64x256xf32, #tpu.memory_space<vmem>>, vector<8x256xf32>
    %c32_41 = arith.constant 32 : index
    %c0_42 = arith.constant 0 : index
    %93 = vector.load %arg15[%c32_41, %c0_42] : memref<64x256xf32, #tpu.memory_space<vmem>>, vector<8x256xf32>
    %94 = arith.addf %92, %93 : vector<8x256xf32>
    %cst_43 = arith.constant dense<0.000000e+00> : vector<8x256xf32>
    %95 = tpu.matmul %87, %7, %cst_43 {dimension_numbers = #tpu.dot_dimension_numbers<[1], [0], [0], [1], [0, 0, 1, 1], [], []>} : vector<8x64xf32>, vector<64x256xf32>, vector<8x256xf32> -> vector<8x256xf32>
    %96 = arith.addf %94, %95 : vector<8x256xf32>
    %97 = vector.broadcast %8 : vector<1x256xf32> to vector<8x256xf32>
    %98 = arith.addf %96, %97 : vector<8x256xf32>
    %99 = vector.extract_strided_slice %98 {offsets = [0, 0], sizes = [8, 192], strides = [1, 1]} : vector<8x256xf32> to vector<8x192xf32>
    %100 = arith.negf %99 : vector<8x192xf32>
    %101 = math.exp %100 : vector<8x192xf32>
    %cst_44 = arith.constant 1.000000e+00 : f32
    %102 = vector.broadcast %cst_44 : f32 to vector<8x192xf32>
    %103 = arith.addf %102, %101 : vector<8x192xf32>
    %104 = arith.divf %102, %103 : vector<8x192xf32>
    %105 = vector.extract_strided_slice %98 {offsets = [0, 192], sizes = [8, 64], strides = [1, 1]} : vector<8x256xf32> to vector<8x64xf32>
    %106 = math.tanh %105 : vector<8x64xf32>
    %107 = vector.extract_strided_slice %104 {offsets = [0, 0], sizes = [8, 64], strides = [1, 1]} : vector<8x192xf32> to vector<8x64xf32>
    %108 = vector.extract_strided_slice %104 {offsets = [0, 64], sizes = [8, 64], strides = [1, 1]} : vector<8x192xf32> to vector<8x64xf32>
    %109 = vector.extract_strided_slice %104 {offsets = [0, 128], sizes = [8, 64], strides = [1, 1]} : vector<8x192xf32> to vector<8x64xf32>
    %110 = arith.mulf %108, %85 : vector<8x64xf32>
    %111 = arith.mulf %107, %106 : vector<8x64xf32>
    %112 = arith.addf %110, %111 : vector<8x64xf32>
    %113 = math.tanh %112 : vector<8x64xf32>
    %114 = arith.mulf %109, %113 : vector<8x64xf32>
    %115 = vector.extract_strided_slice %114 {offsets = [0, 0], sizes = [8, 32], strides = [1, 1]} : vector<8x64xf32> to vector<8x32xf32>
    %c24_45 = arith.constant 24 : index
    %c0_46 = arith.constant 0 : index
    %116 = vector.load %arg13[%c24_45, %c0_46] : memref<64x64xf32, #tpu.memory_space<vmem>>, vector<8x32xf32>
    tpu.vector_store %arg13[%c24_45, %c0_46], %115 {strides = array<i32>} : memref<64x64xf32, #tpu.memory_space<vmem>>, vector<8x32xf32>,
    %117 = vector.extract_strided_slice %114 {offsets = [0, 32], sizes = [8, 32], strides = [1, 1]} : vector<8x64xf32> to vector<8x32xf32>
    %c32_47 = arith.constant 32 : index
    %c32_48 = arith.constant 32 : index
    %118 = vector.load %arg13[%c32_47, %c32_48] : memref<64x64xf32, #tpu.memory_space<vmem>>, vector<8x32xf32>
    tpu.vector_store %arg13[%c32_47, %c32_48], %117 {strides = array<i32>} : memref<64x64xf32, #tpu.memory_space<vmem>>, vector<8x32xf32>,
    %c32_49 = arith.constant 32 : index
    %c0_50 = arith.constant 0 : index
    %119 = vector.load %arg14[%c32_49, %c0_50] : memref<64x256xf32, #tpu.memory_space<vmem>>, vector<8x256xf32>
    %c24_51 = arith.constant 24 : index
    %c0_52 = arith.constant 0 : index
    %120 = vector.load %arg15[%c24_51, %c0_52] : memref<64x256xf32, #tpu.memory_space<vmem>>, vector<8x256xf32>
    %121 = arith.addf %119, %120 : vector<8x256xf32>
    %cst_53 = arith.constant dense<0.000000e+00> : vector<8x256xf32>
    %122 = tpu.matmul %114, %7, %cst_53 {dimension_numbers = #tpu.dot_dimension_numbers<[1], [0], [0], [1], [0, 0, 1, 1], [], []>} : vector<8x64xf32>, vector<64x256xf32>, vector<8x256xf32> -> vector<8x256xf32>
    %123 = arith.addf %121, %122 : vector<8x256xf32>
    %124 = vector.broadcast %8 : vector<1x256xf32> to vector<8x256xf32>
    %125 = arith.addf %123, %124 : vector<8x256xf32>
    %126 = vector.extract_strided_slice %125 {offsets = [0, 0], sizes = [8, 192], strides = [1, 1]} : vector<8x256xf32> to vector<8x192xf32>
    %127 = arith.negf %126 : vector<8x192xf32>
    %128 = math.exp %127 : vector<8x192xf32>
    %cst_54 = arith.constant 1.000000e+00 : f32
    %129 = vector.broadcast %cst_54 : f32 to vector<8x192xf32>
    %130 = arith.addf %129, %128 : vector<8x192xf32>
    %131 = arith.divf %129, %130 : vector<8x192xf32>
    %132 = vector.extract_strided_slice %125 {offsets = [0, 192], sizes = [8, 64], strides = [1, 1]} : vector<8x256xf32> to vector<8x64xf32>
    %133 = math.tanh %132 : vector<8x64xf32>
    %134 = vector.extract_strided_slice %131 {offsets = [0, 0], sizes = [8, 64], strides = [1, 1]} : vector<8x192xf32> to vector<8x64xf32>
    %135 = vector.extract_strided_slice %131 {offsets = [0, 64], sizes = [8, 64], strides = [1, 1]} : vector<8x192xf32> to vector<8x64xf32>
    %136 = vector.extract_strided_slice %131 {offsets = [0, 128], sizes = [8, 64], strides = [1, 1]} : vector<8x192xf32> to vector<8x64xf32>
    %137 = arith.mulf %135, %112 : vector<8x64xf32>
    %138 = arith.mulf %134, %133 : vector<8x64xf32>
    %139 = arith.addf %137, %138 : vector<8x64xf32>
    %140 = math.tanh %139 : vector<8x64xf32>
    %141 = arith.mulf %136, %140 : vector<8x64xf32>
    %142 = vector.extract_strided_slice %141 {offsets = [0, 0], sizes = [8, 32], strides = [1, 1]} : vector<8x64xf32> to vector<8x32xf32>
    %c32_55 = arith.constant 32 : index
    %c0_56 = arith.constant 0 : index
    %143 = vector.load %arg13[%c32_55, %c0_56] : memref<64x64xf32, #tpu.memory_space<vmem>>, vector<8x32xf32>
    tpu.vector_store %arg13[%c32_55, %c0_56], %142 {strides = array<i32>} : memref<64x64xf32, #tpu.memory_space<vmem>>, vector<8x32xf32>,
    %144 = vector.extract_strided_slice %141 {offsets = [0, 32], sizes = [8, 32], strides = [1, 1]} : vector<8x64xf32> to vector<8x32xf32>
    %c24_57 = arith.constant 24 : index
    %c32_58 = arith.constant 32 : index
    %145 = vector.load %arg13[%c24_57, %c32_58] : memref<64x64xf32, #tpu.memory_space<vmem>>, vector<8x32xf32>
    tpu.vector_store %arg13[%c24_57, %c32_58], %144 {strides = array<i32>} : memref<64x64xf32, #tpu.memory_space<vmem>>, vector<8x32xf32>,
    %c40_59 = arith.constant 40 : index
    %c0_60 = arith.constant 0 : index
    %146 = vector.load %arg14[%c40_59, %c0_60] : memref<64x256xf32, #tpu.memory_space<vmem>>, vector<8x256xf32>
    %c16_61 = arith.constant 16 : index
    %c0_62 = arith.constant 0 : index
    %147 = vector.load %arg15[%c16_61, %c0_62] : memref<64x256xf32, #tpu.memory_space<vmem>>, vector<8x256xf32>
    %148 = arith.addf %146, %147 : vector<8x256xf32>
    %cst_63 = arith.constant dense<0.000000e+00> : vector<8x256xf32>
    %149 = tpu.matmul %141, %7, %cst_63 {dimension_numbers = #tpu.dot_dimension_numbers<[1], [0], [0], [1], [0, 0, 1, 1], [], []>} : vector<8x64xf32>, vector<64x256xf32>, vector<8x256xf32> -> vector<8x256xf32>
    %150 = arith.addf %148, %149 : vector<8x256xf32>
    %151 = vector.broadcast %8 : vector<1x256xf32> to vector<8x256xf32>
    %152 = arith.addf %150, %151 : vector<8x256xf32>
    %153 = vector.extract_strided_slice %152 {offsets = [0, 0], sizes = [8, 192], strides = [1, 1]} : vector<8x256xf32> to vector<8x192xf32>
    %154 = arith.negf %153 : vector<8x192xf32>
    %155 = math.exp %154 : vector<8x192xf32>
    %cst_64 = arith.constant 1.000000e+00 : f32
    %156 = vector.broadcast %cst_64 : f32 to vector<8x192xf32>
    %157 = arith.addf %156, %155 : vector<8x192xf32>
    %158 = arith.divf %156, %157 : vector<8x192xf32>
    %159 = vector.extract_strided_slice %152 {offsets = [0, 192], sizes = [8, 64], strides = [1, 1]} : vector<8x256xf32> to vector<8x64xf32>
    %160 = math.tanh %159 : vector<8x64xf32>
    %161 = vector.extract_strided_slice %158 {offsets = [0, 0], sizes = [8, 64], strides = [1, 1]} : vector<8x192xf32> to vector<8x64xf32>
    %162 = vector.extract_strided_slice %158 {offsets = [0, 64], sizes = [8, 64], strides = [1, 1]} : vector<8x192xf32> to vector<8x64xf32>
    %163 = vector.extract_strided_slice %158 {offsets = [0, 128], sizes = [8, 64], strides = [1, 1]} : vector<8x192xf32> to vector<8x64xf32>
    %164 = arith.mulf %162, %139 : vector<8x64xf32>
    %165 = arith.mulf %161, %160 : vector<8x64xf32>
    %166 = arith.addf %164, %165 : vector<8x64xf32>
    %167 = math.tanh %166 : vector<8x64xf32>
    %168 = arith.mulf %163, %167 : vector<8x64xf32>
    %169 = vector.extract_strided_slice %168 {offsets = [0, 0], sizes = [8, 32], strides = [1, 1]} : vector<8x64xf32> to vector<8x32xf32>
    %c40_65 = arith.constant 40 : index
    %c0_66 = arith.constant 0 : index
    %170 = vector.load %arg13[%c40_65, %c0_66] : memref<64x64xf32, #tpu.memory_space<vmem>>, vector<8x32xf32>
    tpu.vector_store %arg13[%c40_65, %c0_66], %169 {strides = array<i32>} : memref<64x64xf32, #tpu.memory_space<vmem>>, vector<8x32xf32>,
    %171 = vector.extract_strided_slice %168 {offsets = [0, 32], sizes = [8, 32], strides = [1, 1]} : vector<8x64xf32> to vector<8x32xf32>
    %c16_67 = arith.constant 16 : index
    %c32_68 = arith.constant 32 : index
    %172 = vector.load %arg13[%c16_67, %c32_68] : memref<64x64xf32, #tpu.memory_space<vmem>>, vector<8x32xf32>
    tpu.vector_store %arg13[%c16_67, %c32_68], %171 {strides = array<i32>} : memref<64x64xf32, #tpu.memory_space<vmem>>, vector<8x32xf32>,
    %c48_69 = arith.constant 48 : index
    %c0_70 = arith.constant 0 : index
    %173 = vector.load %arg14[%c48_69, %c0_70] : memref<64x256xf32, #tpu.memory_space<vmem>>, vector<8x256xf32>
    %c8_71 = arith.constant 8 : index
    %c0_72 = arith.constant 0 : index
    %174 = vector.load %arg15[%c8_71, %c0_72] : memref<64x256xf32, #tpu.memory_space<vmem>>, vector<8x256xf32>
    %175 = arith.addf %173, %174 : vector<8x256xf32>
    %cst_73 = arith.constant dense<0.000000e+00> : vector<8x256xf32>
    %176 = tpu.matmul %168, %7, %cst_73 {dimension_numbers = #tpu.dot_dimension_numbers<[1], [0], [0], [1], [0, 0, 1, 1], [], []>} : vector<8x64xf32>, vector<64x256xf32>, vector<8x256xf32> -> vector<8x256xf32>
    %177 = arith.addf %175, %176 : vector<8x256xf32>
    %178 = vector.broadcast %8 : vector<1x256xf32> to vector<8x256xf32>
    %179 = arith.addf %177, %178 : vector<8x256xf32>
    %180 = vector.extract_strided_slice %179 {offsets = [0, 0], sizes = [8, 192], strides = [1, 1]} : vector<8x256xf32> to vector<8x192xf32>
    %181 = arith.negf %180 : vector<8x192xf32>
    %182 = math.exp %181 : vector<8x192xf32>
    %cst_74 = arith.constant 1.000000e+00 : f32
    %183 = vector.broadcast %cst_74 : f32 to vector<8x192xf32>
    %184 = arith.addf %183, %182 : vector<8x192xf32>
    %185 = arith.divf %183, %184 : vector<8x192xf32>
    %186 = vector.extract_strided_slice %179 {offsets = [0, 192], sizes = [8, 64], strides = [1, 1]} : vector<8x256xf32> to vector<8x64xf32>
    %187 = math.tanh %186 : vector<8x64xf32>
    %188 = vector.extract_strided_slice %185 {offsets = [0, 0], sizes = [8, 64], strides = [1, 1]} : vector<8x192xf32> to vector<8x64xf32>
    %189 = vector.extract_strided_slice %185 {offsets = [0, 64], sizes = [8, 64], strides = [1, 1]} : vector<8x192xf32> to vector<8x64xf32>
    %190 = vector.extract_strided_slice %185 {offsets = [0, 128], sizes = [8, 64], strides = [1, 1]} : vector<8x192xf32> to vector<8x64xf32>
    %191 = arith.mulf %189, %166 : vector<8x64xf32>
    %192 = arith.mulf %188, %187 : vector<8x64xf32>
    %193 = arith.addf %191, %192 : vector<8x64xf32>
    %194 = math.tanh %193 : vector<8x64xf32>
    %195 = arith.mulf %190, %194 : vector<8x64xf32>
    %196 = vector.extract_strided_slice %195 {offsets = [0, 0], sizes = [8, 32], strides = [1, 1]} : vector<8x64xf32> to vector<8x32xf32>
    %c48_75 = arith.constant 48 : index
    %c0_76 = arith.constant 0 : index
    %197 = vector.load %arg13[%c48_75, %c0_76] : memref<64x64xf32, #tpu.memory_space<vmem>>, vector<8x32xf32>
    tpu.vector_store %arg13[%c48_75, %c0_76], %196 {strides = array<i32>} : memref<64x64xf32, #tpu.memory_space<vmem>>, vector<8x32xf32>,
    %198 = vector.extract_strided_slice %195 {offsets = [0, 32], sizes = [8, 32], strides = [1, 1]} : vector<8x64xf32> to vector<8x32xf32>
    %c8_77 = arith.constant 8 : index
    %c32_78 = arith.constant 32 : index
    %199 = vector.load %arg13[%c8_77, %c32_78] : memref<64x64xf32, #tpu.memory_space<vmem>>, vector<8x32xf32>
    tpu.vector_store %arg13[%c8_77, %c32_78], %198 {strides = array<i32>} : memref<64x64xf32, #tpu.memory_space<vmem>>, vector<8x32xf32>,
    %c56_79 = arith.constant 56 : index
    %c0_80 = arith.constant 0 : index
    %200 = vector.load %arg14[%c56_79, %c0_80] : memref<64x256xf32, #tpu.memory_space<vmem>>, vector<8x256xf32>
    %c0_81 = arith.constant 0 : index
    %c0_82 = arith.constant 0 : index
    %201 = vector.load %arg15[%c0_81, %c0_82] : memref<64x256xf32, #tpu.memory_space<vmem>>, vector<8x256xf32>
    %202 = arith.addf %200, %201 : vector<8x256xf32>
    %cst_83 = arith.constant dense<0.000000e+00> : vector<8x256xf32>
    %203 = tpu.matmul %195, %7, %cst_83 {dimension_numbers = #tpu.dot_dimension_numbers<[1], [0], [0], [1], [0, 0, 1, 1], [], []>} : vector<8x64xf32>, vector<64x256xf32>, vector<8x256xf32> -> vector<8x256xf32>
    %204 = arith.addf %202, %203 : vector<8x256xf32>
    %205 = vector.broadcast %8 : vector<1x256xf32> to vector<8x256xf32>
    %206 = arith.addf %204, %205 : vector<8x256xf32>
    %207 = vector.extract_strided_slice %206 {offsets = [0, 0], sizes = [8, 192], strides = [1, 1]} : vector<8x256xf32> to vector<8x192xf32>
    %208 = arith.negf %207 : vector<8x192xf32>
    %209 = math.exp %208 : vector<8x192xf32>
    %cst_84 = arith.constant 1.000000e+00 : f32
    %210 = vector.broadcast %cst_84 : f32 to vector<8x192xf32>
    %211 = arith.addf %210, %209 : vector<8x192xf32>
    %212 = arith.divf %210, %211 : vector<8x192xf32>
    %213 = vector.extract_strided_slice %206 {offsets = [0, 192], sizes = [8, 64], strides = [1, 1]} : vector<8x256xf32> to vector<8x64xf32>
    %214 = math.tanh %213 : vector<8x64xf32>
    %215 = vector.extract_strided_slice %212 {offsets = [0, 0], sizes = [8, 64], strides = [1, 1]} : vector<8x192xf32> to vector<8x64xf32>
    %216 = vector.extract_strided_slice %212 {offsets = [0, 64], sizes = [8, 64], strides = [1, 1]} : vector<8x192xf32> to vector<8x64xf32>
    %217 = vector.extract_strided_slice %212 {offsets = [0, 128], sizes = [8, 64], strides = [1, 1]} : vector<8x192xf32> to vector<8x64xf32>
    %218 = arith.mulf %216, %193 : vector<8x64xf32>
    %219 = arith.mulf %215, %214 : vector<8x64xf32>
    %220 = arith.addf %218, %219 : vector<8x64xf32>
    %221 = math.tanh %220 : vector<8x64xf32>
    %222 = arith.mulf %217, %221 : vector<8x64xf32>
    %223 = vector.extract_strided_slice %222 {offsets = [0, 0], sizes = [8, 32], strides = [1, 1]} : vector<8x64xf32> to vector<8x32xf32>
    %c56_85 = arith.constant 56 : index
    %c0_86 = arith.constant 0 : index
    %224 = vector.load %arg13[%c56_85, %c0_86] : memref<64x64xf32, #tpu.memory_space<vmem>>, vector<8x32xf32>
    tpu.vector_store %arg13[%c56_85, %c0_86], %223 {strides = array<i32>} : memref<64x64xf32, #tpu.memory_space<vmem>>, vector<8x32xf32>,
    %225 = vector.extract_strided_slice %222 {offsets = [0, 32], sizes = [8, 32], strides = [1, 1]} : vector<8x64xf32> to vector<8x32xf32>
    %c0_87 = arith.constant 0 : index
    %c32_88 = arith.constant 32 : index
    %226 = vector.load %arg13[%c0_87, %c32_88] : memref<64x64xf32, #tpu.memory_space<vmem>>, vector<8x32xf32>
    tpu.vector_store %arg13[%c0_87, %c32_88], %225 {strides = array<i32>} : memref<64x64xf32, #tpu.memory_space<vmem>>, vector<8x32xf32>,
    %c0_89 = arith.constant 0 : index
    %c0_90 = arith.constant 0 : index
    %227 = vector.load %arg13[%c0_89, %c0_90] : memref<64x64xf32, #tpu.memory_space<vmem>>, vector<64x64xf32>
    %c0_91 = arith.constant 0 : index
    %c0_92 = arith.constant 0 : index
    %228 = vector.load %arg5[%c0_91, %c0_92] : memref<64x256xf32, #tpu.memory_space<vmem>>, vector<64x256xf32>
    %cst_93 = arith.constant dense<0.000000e+00> : vector<64x256xf32>
    %229 = tpu.matmul %227, %228, %cst_93 {dimension_numbers = #tpu.dot_dimension_numbers<[1], [0], [0], [1], [0, 0, 1, 1], [], []>} : vector<64x64xf32>, vector<64x256xf32>, vector<64x256xf32> -> vector<64x256xf32>
    %c0_94 = arith.constant 0 : index
    %c0_95 = arith.constant 0 : index
    %230 = vector.load %arg14[%c0_94, %c0_95] : memref<64x256xf32, #tpu.memory_space<vmem>>, vector<64x256xf32>
    tpu.vector_store %arg14[%c0_94, %c0_95], %229 {strides = array<i32>} : memref<64x256xf32, #tpu.memory_space<vmem>>, vector<64x256xf32>,
    %c0_96 = arith.constant 0 : index
    %c0_97 = arith.constant 0 : index
    %231 = vector.load %arg6[%c0_96, %c0_97] : memref<64x256xf32, #tpu.memory_space<vmem>>, vector<64x256xf32>
    %cst_98 = arith.constant dense<0.000000e+00> : vector<64x256xf32>
    %232 = tpu.matmul %227, %231, %cst_98 {dimension_numbers = #tpu.dot_dimension_numbers<[1], [0], [0], [1], [0, 0, 1, 1], [], []>} : vector<64x64xf32>, vector<64x256xf32>, vector<64x256xf32> -> vector<64x256xf32>
    %c0_99 = arith.constant 0 : index
    %c0_100 = arith.constant 0 : index
    %233 = vector.load %arg15[%c0_99, %c0_100] : memref<64x256xf32, #tpu.memory_space<vmem>>, vector<64x256xf32>
    tpu.vector_store %arg15[%c0_99, %c0_100], %232 {strides = array<i32>} : memref<64x256xf32, #tpu.memory_space<vmem>>, vector<64x256xf32>,
    %c0_101 = arith.constant 0 : index
    %c0_102 = arith.constant 0 : index
    %234 = vector.load %arg7[%c0_101, %c0_102] : memref<64x256xf32, #tpu.memory_space<vmem>>, vector<64x256xf32>
    %c0_103 = arith.constant 0 : index
    %c0_104 = arith.constant 0 : index
    %235 = vector.load %arg8[%c0_103, %c0_104] : memref<1x256xf32, #tpu.memory_space<vmem>>, vector<1x256xf32>
    %cst_105 = arith.constant 0.000000e+00 : f32
    %236 = vector.broadcast %cst_105 : f32 to vector<8x64xf32>
    %cst_106 = arith.constant 0.000000e+00 : f32
    %237 = vector.broadcast %cst_106 : f32 to vector<8x64xf32>
    %c0_107 = arith.constant 0 : index
    %c0_108 = arith.constant 0 : index
    %238 = vector.load %arg14[%c0_107, %c0_108] : memref<64x256xf32, #tpu.memory_space<vmem>>, vector<8x256xf32>
    %c56_109 = arith.constant 56 : index
    %c0_110 = arith.constant 0 : index
    %239 = vector.load %arg15[%c56_109, %c0_110] : memref<64x256xf32, #tpu.memory_space<vmem>>, vector<8x256xf32>
    %240 = arith.addf %238, %239 : vector<8x256xf32>
    %cst_111 = arith.constant dense<0.000000e+00> : vector<8x256xf32>
    %241 = tpu.matmul %236, %234, %cst_111 {dimension_numbers = #tpu.dot_dimension_numbers<[1], [0], [0], [1], [0, 0, 1, 1], [], []>} : vector<8x64xf32>, vector<64x256xf32>, vector<8x256xf32> -> vector<8x256xf32>
    %242 = arith.addf %240, %241 : vector<8x256xf32>
    %243 = vector.broadcast %235 : vector<1x256xf32> to vector<8x256xf32>
    %244 = arith.addf %242, %243 : vector<8x256xf32>
    %245 = vector.extract_strided_slice %244 {offsets = [0, 0], sizes = [8, 192], strides = [1, 1]} : vector<8x256xf32> to vector<8x192xf32>
    %246 = arith.negf %245 : vector<8x192xf32>
    %247 = math.exp %246 : vector<8x192xf32>
    %cst_112 = arith.constant 1.000000e+00 : f32
    %248 = vector.broadcast %cst_112 : f32 to vector<8x192xf32>
    %249 = arith.addf %248, %247 : vector<8x192xf32>
    %250 = arith.divf %248, %249 : vector<8x192xf32>
    %251 = vector.extract_strided_slice %244 {offsets = [0, 192], sizes = [8, 64], strides = [1, 1]} : vector<8x256xf32> to vector<8x64xf32>
    %252 = math.tanh %251 : vector<8x64xf32>
    %253 = vector.extract_strided_slice %250 {offsets = [0, 0], sizes = [8, 64], strides = [1, 1]} : vector<8x192xf32> to vector<8x64xf32>
    %254 = vector.extract_strided_slice %250 {offsets = [0, 64], sizes = [8, 64], strides = [1, 1]} : vector<8x192xf32> to vector<8x64xf32>
    %255 = vector.extract_strided_slice %250 {offsets = [0, 128], sizes = [8, 64], strides = [1, 1]} : vector<8x192xf32> to vector<8x64xf32>
    %256 = arith.mulf %254, %237 : vector<8x64xf32>
    %257 = arith.mulf %253, %252 : vector<8x64xf32>
    %258 = arith.addf %256, %257 : vector<8x64xf32>
    %259 = math.tanh %258 : vector<8x64xf32>
    %260 = arith.mulf %255, %259 : vector<8x64xf32>
    %c8_113 = arith.constant 8 : index
    %c0_114 = arith.constant 0 : index
    %261 = vector.load %arg14[%c8_113, %c0_114] : memref<64x256xf32, #tpu.memory_space<vmem>>, vector<8x256xf32>
    %c48_115 = arith.constant 48 : index
    %c0_116 = arith.constant 0 : index
    %262 = vector.load %arg15[%c48_115, %c0_116] : memref<64x256xf32, #tpu.memory_space<vmem>>, vector<8x256xf32>
    %263 = arith.addf %261, %262 : vector<8x256xf32>
    %cst_117 = arith.constant dense<0.000000e+00> : vector<8x256xf32>
    %264 = tpu.matmul %260, %234, %cst_117 {dimension_numbers = #tpu.dot_dimension_numbers<[1], [0], [0], [1], [0, 0, 1, 1], [], []>} : vector<8x64xf32>, vector<64x256xf32>, vector<8x256xf32> -> vector<8x256xf32>
    %265 = arith.addf %263, %264 : vector<8x256xf32>
    %266 = vector.broadcast %235 : vector<1x256xf32> to vector<8x256xf32>
    %267 = arith.addf %265, %266 : vector<8x256xf32>
    %268 = vector.extract_strided_slice %267 {offsets = [0, 0], sizes = [8, 192], strides = [1, 1]} : vector<8x256xf32> to vector<8x192xf32>
    %269 = arith.negf %268 : vector<8x192xf32>
    %270 = math.exp %269 : vector<8x192xf32>
    %cst_118 = arith.constant 1.000000e+00 : f32
    %271 = vector.broadcast %cst_118 : f32 to vector<8x192xf32>
    %272 = arith.addf %271, %270 : vector<8x192xf32>
    %273 = arith.divf %271, %272 : vector<8x192xf32>
    %274 = vector.extract_strided_slice %267 {offsets = [0, 192], sizes = [8, 64], strides = [1, 1]} : vector<8x256xf32> to vector<8x64xf32>
    %275 = math.tanh %274 : vector<8x64xf32>
    %276 = vector.extract_strided_slice %273 {offsets = [0, 0], sizes = [8, 64], strides = [1, 1]} : vector<8x192xf32> to vector<8x64xf32>
    %277 = vector.extract_strided_slice %273 {offsets = [0, 64], sizes = [8, 64], strides = [1, 1]} : vector<8x192xf32> to vector<8x64xf32>
    %278 = vector.extract_strided_slice %273 {offsets = [0, 128], sizes = [8, 64], strides = [1, 1]} : vector<8x192xf32> to vector<8x64xf32>
    %279 = arith.mulf %277, %258 : vector<8x64xf32>
    %280 = arith.mulf %276, %275 : vector<8x64xf32>
    %281 = arith.addf %279, %280 : vector<8x64xf32>
    %282 = math.tanh %281 : vector<8x64xf32>
    %283 = arith.mulf %278, %282 : vector<8x64xf32>
    %c16_119 = arith.constant 16 : index
    %c0_120 = arith.constant 0 : index
    %284 = vector.load %arg14[%c16_119, %c0_120] : memref<64x256xf32, #tpu.memory_space<vmem>>, vector<8x256xf32>
    %c40_121 = arith.constant 40 : index
    %c0_122 = arith.constant 0 : index
    %285 = vector.load %arg15[%c40_121, %c0_122] : memref<64x256xf32, #tpu.memory_space<vmem>>, vector<8x256xf32>
    %286 = arith.addf %284, %285 : vector<8x256xf32>
    %cst_123 = arith.constant dense<0.000000e+00> : vector<8x256xf32>
    %287 = tpu.matmul %283, %234, %cst_123 {dimension_numbers = #tpu.dot_dimension_numbers<[1], [0], [0], [1], [0, 0, 1, 1], [], []>} : vector<8x64xf32>, vector<64x256xf32>, vector<8x256xf32> -> vector<8x256xf32>
    %288 = arith.addf %286, %287 : vector<8x256xf32>
    %289 = vector.broadcast %235 : vector<1x256xf32> to vector<8x256xf32>
    %290 = arith.addf %288, %289 : vector<8x256xf32>
    %291 = vector.extract_strided_slice %290 {offsets = [0, 0], sizes = [8, 192], strides = [1, 1]} : vector<8x256xf32> to vector<8x192xf32>
    %292 = arith.negf %291 : vector<8x192xf32>
    %293 = math.exp %292 : vector<8x192xf32>
    %cst_124 = arith.constant 1.000000e+00 : f32
    %294 = vector.broadcast %cst_124 : f32 to vector<8x192xf32>
    %295 = arith.addf %294, %293 : vector<8x192xf32>
    %296 = arith.divf %294, %295 : vector<8x192xf32>
    %297 = vector.extract_strided_slice %290 {offsets = [0, 192], sizes = [8, 64], strides = [1, 1]} : vector<8x256xf32> to vector<8x64xf32>
    %298 = math.tanh %297 : vector<8x64xf32>
    %299 = vector.extract_strided_slice %296 {offsets = [0, 0], sizes = [8, 64], strides = [1, 1]} : vector<8x192xf32> to vector<8x64xf32>
    %300 = vector.extract_strided_slice %296 {offsets = [0, 64], sizes = [8, 64], strides = [1, 1]} : vector<8x192xf32> to vector<8x64xf32>
    %301 = vector.extract_strided_slice %296 {offsets = [0, 128], sizes = [8, 64], strides = [1, 1]} : vector<8x192xf32> to vector<8x64xf32>
    %302 = arith.mulf %300, %281 : vector<8x64xf32>
    %303 = arith.mulf %299, %298 : vector<8x64xf32>
    %304 = arith.addf %302, %303 : vector<8x64xf32>
    %305 = math.tanh %304 : vector<8x64xf32>
    %306 = arith.mulf %301, %305 : vector<8x64xf32>
    %c24_125 = arith.constant 24 : index
    %c0_126 = arith.constant 0 : index
    %307 = vector.load %arg14[%c24_125, %c0_126] : memref<64x256xf32, #tpu.memory_space<vmem>>, vector<8x256xf32>
    %c32_127 = arith.constant 32 : index
    %c0_128 = arith.constant 0 : index
    %308 = vector.load %arg15[%c32_127, %c0_128] : memref<64x256xf32, #tpu.memory_space<vmem>>, vector<8x256xf32>
    %309 = arith.addf %307, %308 : vector<8x256xf32>
    %cst_129 = arith.constant dense<0.000000e+00> : vector<8x256xf32>
    %310 = tpu.matmul %306, %234, %cst_129 {dimension_numbers = #tpu.dot_dimension_numbers<[1], [0], [0], [1], [0, 0, 1, 1], [], []>} : vector<8x64xf32>, vector<64x256xf32>, vector<8x256xf32> -> vector<8x256xf32>
    %311 = arith.addf %309, %310 : vector<8x256xf32>
    %312 = vector.broadcast %235 : vector<1x256xf32> to vector<8x256xf32>
    %313 = arith.addf %311, %312 : vector<8x256xf32>
    %314 = vector.extract_strided_slice %313 {offsets = [0, 0], sizes = [8, 192], strides = [1, 1]} : vector<8x256xf32> to vector<8x192xf32>
    %315 = arith.negf %314 : vector<8x192xf32>
    %316 = math.exp %315 : vector<8x192xf32>
    %cst_130 = arith.constant 1.000000e+00 : f32
    %317 = vector.broadcast %cst_130 : f32 to vector<8x192xf32>
    %318 = arith.addf %317, %316 : vector<8x192xf32>
    %319 = arith.divf %317, %318 : vector<8x192xf32>
    %320 = vector.extract_strided_slice %313 {offsets = [0, 192], sizes = [8, 64], strides = [1, 1]} : vector<8x256xf32> to vector<8x64xf32>
    %321 = math.tanh %320 : vector<8x64xf32>
    %322 = vector.extract_strided_slice %319 {offsets = [0, 0], sizes = [8, 64], strides = [1, 1]} : vector<8x192xf32> to vector<8x64xf32>
    %323 = vector.extract_strided_slice %319 {offsets = [0, 64], sizes = [8, 64], strides = [1, 1]} : vector<8x192xf32> to vector<8x64xf32>
    %324 = vector.extract_strided_slice %319 {offsets = [0, 128], sizes = [8, 64], strides = [1, 1]} : vector<8x192xf32> to vector<8x64xf32>
    %325 = arith.mulf %323, %304 : vector<8x64xf32>
    %326 = arith.mulf %322, %321 : vector<8x64xf32>
    %327 = arith.addf %325, %326 : vector<8x64xf32>
    %328 = math.tanh %327 : vector<8x64xf32>
    %329 = arith.mulf %324, %328 : vector<8x64xf32>
    %c32_131 = arith.constant 32 : index
    %c0_132 = arith.constant 0 : index
    %330 = vector.load %arg14[%c32_131, %c0_132] : memref<64x256xf32, #tpu.memory_space<vmem>>, vector<8x256xf32>
    %c24_133 = arith.constant 24 : index
    %c0_134 = arith.constant 0 : index
    %331 = vector.load %arg15[%c24_133, %c0_134] : memref<64x256xf32, #tpu.memory_space<vmem>>, vector<8x256xf32>
    %332 = arith.addf %330, %331 : vector<8x256xf32>
    %cst_135 = arith.constant dense<0.000000e+00> : vector<8x256xf32>
    %333 = tpu.matmul %329, %234, %cst_135 {dimension_numbers = #tpu.dot_dimension_numbers<[1], [0], [0], [1], [0, 0, 1, 1], [], []>} : vector<8x64xf32>, vector<64x256xf32>, vector<8x256xf32> -> vector<8x256xf32>
    %334 = arith.addf %332, %333 : vector<8x256xf32>
    %335 = vector.broadcast %235 : vector<1x256xf32> to vector<8x256xf32>
    %336 = arith.addf %334, %335 : vector<8x256xf32>
    %337 = vector.extract_strided_slice %336 {offsets = [0, 0], sizes = [8, 192], strides = [1, 1]} : vector<8x256xf32> to vector<8x192xf32>
    %338 = arith.negf %337 : vector<8x192xf32>
    %339 = math.exp %338 : vector<8x192xf32>
    %cst_136 = arith.constant 1.000000e+00 : f32
    %340 = vector.broadcast %cst_136 : f32 to vector<8x192xf32>
    %341 = arith.addf %340, %339 : vector<8x192xf32>
    %342 = arith.divf %340, %341 : vector<8x192xf32>
    %343 = vector.extract_strided_slice %336 {offsets = [0, 192], sizes = [8, 64], strides = [1, 1]} : vector<8x256xf32> to vector<8x64xf32>
    %344 = math.tanh %343 : vector<8x64xf32>
    %345 = vector.extract_strided_slice %342 {offsets = [0, 0], sizes = [8, 64], strides = [1, 1]} : vector<8x192xf32> to vector<8x64xf32>
    %346 = vector.extract_strided_slice %342 {offsets = [0, 64], sizes = [8, 64], strides = [1, 1]} : vector<8x192xf32> to vector<8x64xf32>
    %347 = vector.extract_strided_slice %342 {offsets = [0, 128], sizes = [8, 64], strides = [1, 1]} : vector<8x192xf32> to vector<8x64xf32>
    %348 = arith.mulf %346, %327 : vector<8x64xf32>
    %349 = arith.mulf %345, %344 : vector<8x64xf32>
    %350 = arith.addf %348, %349 : vector<8x64xf32>
    %351 = math.tanh %350 : vector<8x64xf32>
    %352 = arith.mulf %347, %351 : vector<8x64xf32>
    %c40_137 = arith.constant 40 : index
    %c0_138 = arith.constant 0 : index
    %353 = vector.load %arg14[%c40_137, %c0_138] : memref<64x256xf32, #tpu.memory_space<vmem>>, vector<8x256xf32>
    %c16_139 = arith.constant 16 : index
    %c0_140 = arith.constant 0 : index
    %354 = vector.load %arg15[%c16_139, %c0_140] : memref<64x256xf32, #tpu.memory_space<vmem>>, vector<8x256xf32>
    %355 = arith.addf %353, %354 : vector<8x256xf32>
    %cst_141 = arith.constant dense<0.000000e+00> : vector<8x256xf32>
    %356 = tpu.matmul %352, %234, %cst_141 {dimension_numbers = #tpu.dot_dimension_numbers<[1], [0], [0], [1], [0, 0, 1, 1], [], []>} : vector<8x64xf32>, vector<64x256xf32>, vector<8x256xf32> -> vector<8x256xf32>
    %357 = arith.addf %355, %356 : vector<8x256xf32>
    %358 = vector.broadcast %235 : vector<1x256xf32> to vector<8x256xf32>
    %359 = arith.addf %357, %358 : vector<8x256xf32>
    %360 = vector.extract_strided_slice %359 {offsets = [0, 0], sizes = [8, 192], strides = [1, 1]} : vector<8x256xf32> to vector<8x192xf32>
    %361 = arith.negf %360 : vector<8x192xf32>
    %362 = math.exp %361 : vector<8x192xf32>
    %cst_142 = arith.constant 1.000000e+00 : f32
    %363 = vector.broadcast %cst_142 : f32 to vector<8x192xf32>
    %364 = arith.addf %363, %362 : vector<8x192xf32>
    %365 = arith.divf %363, %364 : vector<8x192xf32>
    %366 = vector.extract_strided_slice %359 {offsets = [0, 192], sizes = [8, 64], strides = [1, 1]} : vector<8x256xf32> to vector<8x64xf32>
    %367 = math.tanh %366 : vector<8x64xf32>
    %368 = vector.extract_strided_slice %365 {offsets = [0, 0], sizes = [8, 64], strides = [1, 1]} : vector<8x192xf32> to vector<8x64xf32>
    %369 = vector.extract_strided_slice %365 {offsets = [0, 64], sizes = [8, 64], strides = [1, 1]} : vector<8x192xf32> to vector<8x64xf32>
    %370 = vector.extract_strided_slice %365 {offsets = [0, 128], sizes = [8, 64], strides = [1, 1]} : vector<8x192xf32> to vector<8x64xf32>
    %371 = arith.mulf %369, %350 : vector<8x64xf32>
    %372 = arith.mulf %368, %367 : vector<8x64xf32>
    %373 = arith.addf %371, %372 : vector<8x64xf32>
    %374 = math.tanh %373 : vector<8x64xf32>
    %375 = arith.mulf %370, %374 : vector<8x64xf32>
    %c48_143 = arith.constant 48 : index
    %c0_144 = arith.constant 0 : index
    %376 = vector.load %arg14[%c48_143, %c0_144] : memref<64x256xf32, #tpu.memory_space<vmem>>, vector<8x256xf32>
    %c8_145 = arith.constant 8 : index
    %c0_146 = arith.constant 0 : index
    %377 = vector.load %arg15[%c8_145, %c0_146] : memref<64x256xf32, #tpu.memory_space<vmem>>, vector<8x256xf32>
    %378 = arith.addf %376, %377 : vector<8x256xf32>
    %cst_147 = arith.constant dense<0.000000e+00> : vector<8x256xf32>
    %379 = tpu.matmul %375, %234, %cst_147 {dimension_numbers = #tpu.dot_dimension_numbers<[1], [0], [0], [1], [0, 0, 1, 1], [], []>} : vector<8x64xf32>, vector<64x256xf32>, vector<8x256xf32> -> vector<8x256xf32>
    %380 = arith.addf %378, %379 : vector<8x256xf32>
    %381 = vector.broadcast %235 : vector<1x256xf32> to vector<8x256xf32>
    %382 = arith.addf %380, %381 : vector<8x256xf32>
    %383 = vector.extract_strided_slice %382 {offsets = [0, 0], sizes = [8, 192], strides = [1, 1]} : vector<8x256xf32> to vector<8x192xf32>
    %384 = arith.negf %383 : vector<8x192xf32>
    %385 = math.exp %384 : vector<8x192xf32>
    %cst_148 = arith.constant 1.000000e+00 : f32
    %386 = vector.broadcast %cst_148 : f32 to vector<8x192xf32>
    %387 = arith.addf %386, %385 : vector<8x192xf32>
    %388 = arith.divf %386, %387 : vector<8x192xf32>
    %389 = vector.extract_strided_slice %382 {offsets = [0, 192], sizes = [8, 64], strides = [1, 1]} : vector<8x256xf32> to vector<8x64xf32>
    %390 = math.tanh %389 : vector<8x64xf32>
    %391 = vector.extract_strided_slice %388 {offsets = [0, 0], sizes = [8, 64], strides = [1, 1]} : vector<8x192xf32> to vector<8x64xf32>
    %392 = vector.extract_strided_slice %388 {offsets = [0, 64], sizes = [8, 64], strides = [1, 1]} : vector<8x192xf32> to vector<8x64xf32>
    %393 = vector.extract_strided_slice %388 {offsets = [0, 128], sizes = [8, 64], strides = [1, 1]} : vector<8x192xf32> to vector<8x64xf32>
    %394 = arith.mulf %392, %373 : vector<8x64xf32>
    %395 = arith.mulf %391, %390 : vector<8x64xf32>
    %396 = arith.addf %394, %395 : vector<8x64xf32>
    %397 = math.tanh %396 : vector<8x64xf32>
    %398 = arith.mulf %393, %397 : vector<8x64xf32>
    %c56_149 = arith.constant 56 : index
    %c0_150 = arith.constant 0 : index
    %399 = vector.load %arg14[%c56_149, %c0_150] : memref<64x256xf32, #tpu.memory_space<vmem>>, vector<8x256xf32>
    %c0_151 = arith.constant 0 : index
    %c0_152 = arith.constant 0 : index
    %400 = vector.load %arg15[%c0_151, %c0_152] : memref<64x256xf32, #tpu.memory_space<vmem>>, vector<8x256xf32>
    %401 = arith.addf %399, %400 : vector<8x256xf32>
    %cst_153 = arith.constant dense<0.000000e+00> : vector<8x256xf32>
    %402 = tpu.matmul %398, %234, %cst_153 {dimension_numbers = #tpu.dot_dimension_numbers<[1], [0], [0], [1], [0, 0, 1, 1], [], []>} : vector<8x64xf32>, vector<64x256xf32>, vector<8x256xf32> -> vector<8x256xf32>
    %403 = arith.addf %401, %402 : vector<8x256xf32>
    %404 = vector.broadcast %235 : vector<1x256xf32> to vector<8x256xf32>
    %405 = arith.addf %403, %404 : vector<8x256xf32>
    %406 = vector.extract_strided_slice %405 {offsets = [0, 0], sizes = [8, 192], strides = [1, 1]} : vector<8x256xf32> to vector<8x192xf32>
    %407 = arith.negf %406 : vector<8x192xf32>
    %408 = math.exp %407 : vector<8x192xf32>
    %cst_154 = arith.constant 1.000000e+00 : f32
    %409 = vector.broadcast %cst_154 : f32 to vector<8x192xf32>
    %410 = arith.addf %409, %408 : vector<8x192xf32>
    %411 = arith.divf %409, %410 : vector<8x192xf32>
    %412 = vector.extract_strided_slice %405 {offsets = [0, 192], sizes = [8, 64], strides = [1, 1]} : vector<8x256xf32> to vector<8x64xf32>
    %413 = math.tanh %412 : vector<8x64xf32>
    %414 = vector.extract_strided_slice %411 {offsets = [0, 0], sizes = [8, 64], strides = [1, 1]} : vector<8x192xf32> to vector<8x64xf32>
    %415 = vector.extract_strided_slice %411 {offsets = [0, 64], sizes = [8, 64], strides = [1, 1]} : vector<8x192xf32> to vector<8x64xf32>
    %416 = vector.extract_strided_slice %411 {offsets = [0, 128], sizes = [8, 64], strides = [1, 1]} : vector<8x192xf32> to vector<8x64xf32>
    %417 = arith.mulf %415, %396 : vector<8x64xf32>
    %418 = arith.mulf %414, %413 : vector<8x64xf32>
    %419 = arith.addf %417, %418 : vector<8x64xf32>
    %420 = math.tanh %419 : vector<8x64xf32>
    %421 = arith.mulf %416, %420 : vector<8x64xf32>
    %422 = tpu.concatenate %222, %421 in 1 : vector<8x64xf32>, vector<8x64xf32> -> vector<8x128xf32>
    %c0_155 = arith.constant 0 : index
    %c0_156 = arith.constant 0 : index
    %423 = vector.load %arg9[%c0_155, %c0_156] : memref<128x32xf32, #tpu.memory_space<vmem>>, vector<128x32xf32>
    %cst_157 = arith.constant dense<0.000000e+00> : vector<8x32xf32>
    %424 = tpu.matmul %422, %423, %cst_157 {dimension_numbers = #tpu.dot_dimension_numbers<[1], [0], [0], [1], [0, 0, 1, 1], [], []>} : vector<8x128xf32>, vector<128x32xf32>, vector<8x32xf32> -> vector<8x32xf32>
    %c0_158 = arith.constant 0 : index
    %c0_159 = arith.constant 0 : index
    %425 = vector.load %arg10[%c0_158, %c0_159] : memref<1x32xf32, #tpu.memory_space<vmem>>, vector<1x32xf32>
    %426 = vector.broadcast %425 : vector<1x32xf32> to vector<8x32xf32>
    %427 = arith.addf %424, %426 : vector<8x32xf32>
    %428 = vector.extract_strided_slice %427 {offsets = [0, 0], sizes = [8, 16], strides = [1, 1]} : vector<8x32xf32> to vector<8x16xf32>
    %429 = vector.extract_strided_slice %427 {offsets = [0, 16], sizes = [8, 16], strides = [1, 1]} : vector<8x32xf32> to vector<8x16xf32>
    %cst_160 = arith.constant 5.000000e-01 : f32
    %430 = vector.broadcast %cst_160 : f32 to vector<8x16xf32>
    %431 = arith.mulf %429, %430 : vector<8x16xf32>
    %432 = math.exp %431 : vector<8x16xf32>
    %c0_161 = arith.constant 0 : index
    %c0_162 = arith.constant 0 : index
    %433 = vector.load %arg11[%c0_161, %c0_162] : memref<8x16xf32, #tpu.memory_space<vmem>>, vector<8x16xf32>
    %434 = arith.mulf %432, %433 : vector<8x16xf32>
    %435 = arith.addf %428, %434 : vector<8x16xf32>
    %436 = tpu.concatenate %435, %428, %429 in 1 : vector<8x16xf32>, vector<8x16xf32>, vector<8x16xf32> -> vector<8x48xf32>
    %c0_163 = arith.constant 0 : index
    %c0_164 = arith.constant 0 : index
    %437 = vector.load %arg12[%c0_163, %c0_164] : memref<8x48xf32, #tpu.memory_space<vmem>>, vector<8x48xf32>
    tpu.vector_store %arg12[%c0_163, %c0_164], %436 {strides = array<i32>} : memref<8x48xf32, #tpu.memory_space<vmem>>, vector<8x48xf32>,
    return
  }
}

</mosaic_0001>

<bundles_post_ra>
// kernel: sketch_rnn_encoder_forward.1
= control target key start
LH: loop header
LB: loop body
LE: loop exit
PB: predicated region body
PF: predicated region fallthrough
CT: control target
= control target key end

     0   :  { %17 = vsyncpa [#allocation6], 0  ;;  %s4132_s0 = inlined_call_operand.vmem [shape: f32[64,8], index: 0, kind: input, shape index: {}]   ;;  %s4133_s1 = inlined_call_operand.hbm [shape: f32[8,256], index: 1, kind: input, shape index: {}]   ;;  %s4134_s2 = inlined_call_operand.hbm [shape: f32[8,256], index: 2, kind: input, shape index: {}]   ;;  %s4135_s3 = inlined_call_operand.vmem [shape: f32[64,256], index: 3, kind: input, shape index: {}]   ;;  %s4136_s4 = inlined_call_operand.hbm [shape: f32[1,256], index: 4, kind: input, shape index: {}]   ;;  %s4137_s5 = inlined_call_operand.vmem [shape: f32[64,256], index: 5, kind: input, shape index: {}]   ;;  %s4138_s6 = inlined_call_operand.hbm [shape: f32[64,256], index: 6, kind: input, shape index: {}]   ;;  %s4139_s7 = inlined_call_operand.hbm [shape: f32[64,256], index: 7, kind: input, shape index: {}]   ;;  %s4140_s8 = inlined_call_operand.vmem [shape: f32[1,256], index: 8, kind: input, shape index: {}]   ;;  %s4141_s9 = inlined_call_operand.vmem [shape: f32[128,32], index: 9, kind: input, shape index: {}]   ;;  %s4142_s10 = inlined_call_operand.vmem [shape: f32[1,32], index: 10, kind: input, shape index: {}]   ;;  %s4143_s11 = inlined_call_operand.vmem [shape: f32[8,16], index: 11, kind: input, shape index: {}]   ;;  %s4144_s12 = inlined_call_operand.vmem [shape: f32[8,48], index: 12, kind: output, shape index: {}]  }
   0x1   :  { %18 = vsyncpa [#allocation8], 0 }
   0x2   :  { %19 = vsyncpa [#allocation11], 0  ;;  %s3188_s21 = smov [#allocation7]   ;;  %s3189_s23 = smov [#allocation10]  }
   0x3   :  { %s38_s22 = sshll.u32 %s3188_s21, 4  ;;  %s61_s24 = sshll.u32 %s3189_s23, 4  ;;  %s39_s22 = int_to_ptr.vmem [resolvable:$true] %s38_s22  ;;  %s62_s24 = int_to_ptr.vmem [resolvable:$true] %s61_s24 }
   0x4   :  { %s3090_s25 = scalar_lea.vmem %s39_s22, 256  ;;  %p3095_p1 = scmp.lt.s32.totalorder %s39_s22, %s39_s22 }
   0x5   :  { %p3091_p0 = scmp.ne.s32.totalorder %s39_s22, %s3090_s25  ;;  %p3096_p2 = scmp.lt.s32.totalorder %s3090_s25, %s3090_s25 }
   0x7   :  { %p3097_p3 = por %p3096_p2, %p3095_p1 }
   0x9   :  { %p3098_p4 = pnand %p3097_p3, %p3091_p0 }
   0xb   :  { %3101 = shalt.err (!%p3098_p4)
}
   0xc   :  { %41 = dma.hbm_to_vmem [thread:$0]  %s4134_s2, 256, %s39_s22, [#allocation8]  }
   0xd   :  { %s3110_s28 = scalar_lea.vmem %s62_s24, 2048  ;;  %p3115_p6 = scmp.lt.s32.totalorder %s62_s24, %s62_s24 }
   0xe   :  { %p3111_p5 = scmp.ne.s32.totalorder %s62_s24, %s3110_s28  ;;  %p3116_p7 = scmp.lt.s32.totalorder %s3110_s28, %s3110_s28 }
  0x10   :  { %p3117_p8 = por %p3116_p7, %p3115_p6 }
  0x12   :  { %p3118_p9 = pnand %p3117_p8, %p3111_p5 }
  0x14   :  { %3121 = shalt.err (!%p3118_p9)
}
  0x15   :  { %s3190_s29 = smov 256   ;;  %s3191_s30 = smov 16  }
  0x16   :  { %67 = dma.hbm_to_vmem [thread:$0]  %s4138_s6, 2048, %s62_s24, [#allocation11], %s3190_s29, %s3190_s29, %s3191_s30  }
  0x17   :  { %s3192_s15 = smov [#allocation5]   ;;  %s3193_s17 = smov [#allocation9]  }
  0x18   :  { %s28_s16 = sshll.u32 %s3192_s15, 4  ;;  %s50_s2 = sshll.u32 %s3193_s17, 4  ;;  %s29_s16 = int_to_ptr.vmem [resolvable:$true] %s28_s16  ;;  %s51_s2 = int_to_ptr.vmem [resolvable:$true] %s50_s2 }
  0x19   :  { %s3130_s18 = scalar_lea.vmem %s29_s16, 256  ;;  %p3135_p11 = scmp.lt.s32.totalorder %s29_s16, %s29_s16 }
  0x1a   :  { %p3131_p10 = scmp.ne.s32.totalorder %s29_s16, %s3130_s18  ;;  %p3136_p12 = scmp.lt.s32.totalorder %s3130_s18, %s3130_s18 }
  0x1c   :  { %p3137_p13 = por %p3136_p12, %p3135_p11 }
  0x1e   :  { %p3138_p0 = pnand %p3137_p13, %p3131_p10 }
  0x20   :  { %3141 = shalt.err (!%p3138_p0)
}
  0x21   :  { %31 = dma.hbm_to_vmem [thread:$0]  %s4133_s1, 256, %s29_s16, [#allocation6]  }
  0x22   :  { %s3150_s21 = scalar_lea.vmem %s51_s2, 32  ;;  %p3155_p2 = scmp.lt.s32.totalorder %s51_s2, %s51_s2 }
  0x23   :  { %p3151_p1 = scmp.ne.s32.totalorder %s51_s2, %s3150_s21  ;;  %p3156_p3 = scmp.lt.s32.totalorder %s3150_s21, %s3150_s21 }
  0x25   :  { %p3157_p4 = por %p3156_p3, %p3155_p2 }
  0x27   :  { %p3158_p5 = pnand %p3157_p4, %p3151_p1 }
  0x29   :  { %3161 = shalt.err (!%p3158_p5)
}
  0x2a   :  { %53 = dma.hbm_to_vmem [thread:$0]  %s4136_s4, 32, %s51_s2, [#allocation8]  }
  0x2b   :  { %s3194_s23 = smov [#allocation12]  }
  0x2c   :  { %s73_s24 = sshll.u32 %s3194_s23, 4  ;;  %s74_s24 = int_to_ptr.vmem [resolvable:$true] %s73_s24 }
  0x2d   :  { %s3170_s25 = scalar_lea.vmem %s74_s24, 2048  ;;  %p3175_p7 = scmp.lt.s32.totalorder %s74_s24, %s74_s24 }
  0x2e   :  { %p3171_p6 = scmp.ne.s32.totalorder %s74_s24, %s3170_s25  ;;  %p3176_p8 = scmp.lt.s32.totalorder %s3170_s25, %s3170_s25 }
  0x30   :  { %p3177_p9 = por %p3176_p8, %p3175_p7 }
  0x32   :  { %p3178_p10 = pnand %p3177_p9, %p3171_p6 }
  0x34   :  { %3181 = shalt.err (!%p3178_p10)
}
  0x35   :  { %79 = dma.hbm_to_vmem [thread:$0]  %s4139_s7, 2048, %s74_s24, [#allocation11], %s3190_s29, %s3190_s29, %s3191_s30  }
  0x36   :  { %3182 = dma.done.wait [#allocation6], 256  }
  0x37   :  { %3183 = vsyncadd [#allocation6], 4294967040 }
  0x38   :  { %3184 = dma.done.wait [#allocation8], 288  }
  0x39   :  { %3185 = vsyncadd [#allocation8], 4294967008 }
  0x3a   :  { %3186 = dma.done.wait [#allocation11], 4096  }
  0x3b   :  { %3187 = vsyncadd [#allocation11], 4294963200  ;;  %v3195_v0 = vmov 0.0   ;;  %v112_v1 = vld [vmem:[#allocation5 + $0x8] sm:$0xff]  ;;  %v111_v2 = vld [vmem:[#allocation5] sm:$0xff]  ;;  %vm113_vm0 = vcmask 64512  }
  0x3c   :  { %226 = vmatprep.mubr.f32.mxu1 %v3195_v0  ;;  %202 = vmatprep.mubr.f32.mxu0 %v3195_v0  ;;  %v3290_v3 = vld [vmem:[%s4132_s0 + $0x20] sm:$0xff]  ;;  %v268_v4 = vld [vmem:[#allocation7 + $0x8] sm:$0xff]  ;;  %v267_v5 = vld [vmem:[#allocation7] sm:$0xff]  ;;  %vm541_vm1 = vcmask 261120   ;;  %vm543_vm2 = vcmask 523520   ;;  %vm421_vm3 = vcmask 523264  }
  0x3d   :  { %2875 = vmatprep.subr.mxu1 %v112_v1  ;;  %168 = vmatprep.subr.mxu0 %v112_v1  ;;  %v3297_v6 = vld [vmem:[%s4132_s0 + $0x28] sm:$0xff]  ;;  %v103_v7 = vld [vmem:[%s4132_s0] sm:$0xff]  ;;  %v3306_v8 = vld [vmem:[%s4135_s3 + $0x78] sm:$0xff]  ;;  %vm3197_vm4 = vmmov 0   ;;  %vm2732_vm5 = vcmask 130048   ;;  %vm2735_vm6 = vcmask 392192  }
  0x3e   :  { %2876 = vmatpush1.msra.mxu1 %v111_v2  ;;  %169 = vmatpush1.msra.mxu0 %v111_v2  ;;  %v3311_v9 = vld [vmem:[%s4135_s3 + $0x70] sm:$0xff]  ;;  %v3316_v10 = vld [vmem:[%s4135_s3 + $0x68] sm:$0xff]  ;;  %v3323_v11 = vld [vmem:[%s4135_s3 + $0x60] sm:$0xff] }
  0x3f   :  { %2748 = vmatmul.mubr.msk.f32.vlgmr.msra.gmra.mxu1 %vm113_vm0, %v3290_v3  ;;  %299 = vmatprep.subr.mxu1 %v268_v4  ;;  %v3330_v12 = vld [vmem:[%s4135_s3 + $0x58] sm:$0xff]  ;;  %v3338_v13 = vld [vmem:[%s4135_s3 + $0x50] sm:$0xff]  ;;  %v104_v15 = vld [vmem:[%s4132_s0 + $0x8] sm:$0xff]  ;;  %v499_v4 = vlaneseq }
  0x40   :  { %300 = vmatpush1.msra.mxu1 %v267_v5  ;;  %232 = vmatprep.mubr.f32.mxu1 %v3195_v0  ;;  %v3344_v14 = vld [vmem:[%s4132_s0 + $0x30] sm:$0xff]  ;;  %v3353_v16 = vld [vmem:[%s4135_s3 + $0x48] sm:$0xff]  ;;  %v3360_v17 = vld [vmem:[%s4135_s3 + $0x40] sm:$0xff] }
  0x41   :  { %2744 = vmatmul.mubr.msk.f32.vlgmr.msra.gmra.mxu0 %vm113_vm0, %v103_v7  ;;  %441 = vmatprep.subr.mxu0 %v3306_v8  ;;  %v3367_v18 = vld [vmem:[%s4135_s3 + $0x38] sm:$0xff]  ;;  %v3375_v19 = vld [vmem:[%s4135_s3 + $0x30] sm:$0xff]  ;;  %v3390_v22 = vld [vmem:[%s4135_s3 + $0x28] sm:$0xff] }
  0x42   :  { %208 = vmatprep.mubr.f32.mxu0 %v3195_v0  ;;  %442 = vmatpush1.msra.mxu0 %v3311_v9  ;;  %v3381_v20 = vld [vmem:[%s4132_s0 + $0x38] sm:$0xff]  ;;  %v105_v21 = vld [vmem:[%s4132_s0 + $0x10] sm:$0xff]  ;;  %v3397_v23 = vld [vmem:[%s4135_s3 + $0x20] sm:$0xff] }
  0x43   :  { %2749 = vmatmul.mubr.msk.f32.gmra.mxu1 %vm113_vm0, %v3297_v6  ;;  %443 = vmatprep.subr.mxu0 %v3316_v10  ;;  %v3404_v24 = vld [vmem:[%s4135_s3 + $0x18] sm:$0xff]  ;;  %v3412_v25 = vld [vmem:[%s4135_s3 + $0x10] sm:$0xff]  ;;  %v3422_v27 = vld [vmem:[%s4135_s3 + $0x8] sm:$0xff] }
  0x44   :  { %238 = vmatprep.mubr.f32.mxu1 %v3195_v0  ;;  %444 = vmatpush1.msra.mxu0 %v3323_v11  ;;  %v106_v26 = vld [vmem:[%s4132_s0 + $0x18] sm:$0xff]  ;;  %v3429_v28 = vld [vmem:[%s4135_s3] sm:$0xff]  ;;  %s3196_s0 = smov 64  }
  0x45   :  { %2745 = vmatmul.mubr.msk.f32.gmra.mxu0 %vm113_vm0, %v104_v15  ;;  %445 = vmatprep.subr.mxu0 %v3330_v12 }
  0x46   :  { %214 = vmatprep.mubr.f32.mxu0 %v3195_v0  ;;  %446 = vmatpush1.msra.mxu0 %v3338_v13 }
  0x47   :  { %2750 = vmatmul.mubr.msk.f32.gmra.mxu1 %vm113_vm0, %v3344_v14  ;;  %447 = vmatprep.subr.mxu0 %v3353_v16 }
  0x48   :  { %244 = vmatprep.mubr.f32.mxu1 %v3195_v0  ;;  %448 = vmatpush1.msra.mxu0 %v3360_v17 }
  0x49   :  { %2746 = vmatmul.mubr.msk.f32.gmra.mxu0 %vm113_vm0, %v105_v21  ;;  %449 = vmatprep.subr.mxu0 %v3367_v18 }
  0x4a   :  { %220 = vmatprep.mubr.f32.mxu0 %v3195_v0  ;;  %450 = vmatpush1.msra.mxu0 %v3375_v19 }
  0x4b   :  { %2751 = vmatmul.mubr.msk.f32.gmra.mxu1 %vm113_vm0, %v3381_v20  ;;  %451 = vmatprep.subr.mxu0 %v3390_v22 }
  0x4c   :  { %333 = vmatprep.mubr.f32.mxu1 %v3195_v0  ;;  %452 = vmatpush1.msra.mxu0 %v3397_v23 }
  0x4d   :  { %2747 = vmatmul.mubr.msk.f32.gmra.mxu0 %vm113_vm0, %v106_v26  ;;  %453 = vmatprep.subr.mxu0 %v3404_v24 }
  0x4e   :  { %454 = vmatpush1.msra.mxu0 %v3412_v25  ;;  %489 = vmatprep.mubr.f32.mxu0 %v3195_v0 }
  0x4f   :  { %2752 = vmatmul.mubr.msk.f32.vlgmr.msra.gmra.mxu1 %vm113_vm0, %v103_v7  ;;  %455 = vmatprep.subr.mxu0 %v3422_v27 }
  0x50   :  { %339 = vmatprep.mubr.f32.mxu1 %v3195_v0  ;;  %456 = vmatpush1.msra.mxu0 %v3429_v28 }
  0x51   :  { %490 = vmatmul.mubr.f32.vlgmr.msra.gmra.mxu0 %v3195_v0  ;;  %570 = vmatprep.subr.mxu1 %v3306_v8 }
  0x52   :  { %571 = vmatpush1.msra.mxu1 %v3311_v9  ;;  %686 = vmatprep.subr.mxu0 %v3306_v8 }
  0x53   :  { %2753 = vmatmul.mubr.msk.f32.gmra.mxu1 %vm113_vm0, %v104_v15  ;;  %572 = vmatprep.subr.mxu1 %v3316_v10  ;;  %v3517_v15 = vshrl.u32 %v499_v4, 7 }
  0x54   :  { %345 = vmatprep.mubr.f32.mxu1 %v3195_v0  ;;  %573 = vmatpush1.msra.mxu1 %v3323_v11 }
  0x55   :  { %574 = vmatprep.subr.mxu1 %v3330_v12  ;;  %687 = vmatpush1.msra.mxu0 %v3311_v9 }
  0x56   :  { %575 = vmatpush1.msra.mxu1 %v3338_v13  ;;  %688 = vmatprep.subr.mxu0 %v3316_v10 }
  0x57   :  { %2754 = vmatmul.mubr.msk.f32.gmra.mxu1 %vm113_vm0, %v105_v21  ;;  %576 = vmatprep.subr.mxu1 %v3353_v16 }
  0x58   :  { %351 = vmatprep.mubr.f32.mxu1 %v3195_v0  ;;  %577 = vmatpush1.msra.mxu1 %v3360_v17 }
  0x59   :  { %578 = vmatprep.subr.mxu1 %v3367_v18  ;;  %689 = vmatpush1.msra.mxu0 %v3323_v11 }
  0x5a   :  { %579 = vmatpush1.msra.mxu1 %v3375_v19  ;;  %690 = vmatprep.subr.mxu0 %v3330_v12 }
  0x5b   :  { %2755 = vmatmul.mubr.msk.f32.gmra.mxu1 %vm113_vm0, %v106_v26  ;;  %580 = vmatprep.subr.mxu1 %v3390_v22  ;;  %v505_v26 = vsub.s32 1, %v3517_v15 }
  0x5c   :  { %357 = vmatprep.mubr.f32.mxu1 %v3195_v0  ;;  %581 = vmatpush1.msra.mxu1 %v3397_v23 }
  0x5d   :  { %582 = vmatprep.subr.mxu1 %v3404_v24  ;;  %691 = vmatpush1.msra.mxu0 %v3338_v13 }
  0x5e   :  { %583 = vmatpush1.msra.mxu1 %v3412_v25  ;;  %692 = vmatprep.subr.mxu0 %v3353_v16 }
  0x5f   :  { %2756 = vmatmul.mubr.msk.f32.gmra.mxu1 %vm113_vm0, %v3290_v3  ;;  %584 = vmatprep.subr.mxu1 %v3422_v27 }
  0x60   :  { %363 = vmatprep.mubr.f32.mxu1 %v3195_v0  ;;  %585 = vmatpush1.msra.mxu1 %v3429_v28 }
  0x61   :  { %693 = vmatpush1.msra.mxu0 %v3360_v17  ;;  %734 = vmatprep.mubr.f32.mxu0 %v3195_v0 }
  0x62   :  { %694 = vmatprep.subr.mxu0 %v3367_v18  ;;  %802 = vmatprep.subr.mxu1 %v3306_v8 }
  0x63   :  { %2757 = vmatmul.mubr.msk.f32.gmra.mxu1 %vm113_vm0, %v3297_v6  ;;  %695 = vmatpush1.msra.mxu0 %v3375_v19 }
  0x64   :  { %369 = vmatprep.mubr.f32.mxu1 %v3195_v0  ;;  %696 = vmatprep.subr.mxu0 %v3390_v22 }
  0x65   :  { %697 = vmatpush1.msra.mxu0 %v3397_v23 }
  0x66   :  { %698 = vmatprep.subr.mxu0 %v3404_v24 }
  0x67   :  { %2758 = vmatmul.mubr.msk.f32.gmra.mxu1 %vm113_vm0, %v3344_v14  ;;  %699 = vmatpush1.msra.mxu0 %v3412_v25 }
  0x68   :  { %375 = vmatprep.mubr.f32.mxu1 %v3195_v0  ;;  %700 = vmatprep.subr.mxu0 %v3422_v27 }
  0x69   :  { %701 = vmatpush1.msra.mxu0 %v3429_v28 }
  0x6a   :  { %918 = vmatprep.subr.mxu0 %v3306_v8 }
  0x6b   :  { %2759 = vmatmul.mubr.msk.f32.gmra.mxu1 %vm113_vm0, %v3381_v20 }
  0x6c   :  { %618 = vmatprep.mubr.f32.mxu1 %v3195_v0 }
  0xff   :  { %v228_v29 = vpop.f32.mrf.mxu1 }
 0x101   :  { %v230_v30 = vpop.f32.mrf.mxu1  ;;  %v204_v32 = vpop.f32.mrf.mxu0 }
 0x103   :  { %v234_v31 = vpop.f32.mrf.mxu1  ;;  %v206_v35 = vpop.f32.mrf.mxu0 }
 0x105   :  { %v236_v33 = vpop.f32.mrf.mxu1  ;;  %v210_v38 = vpop.f32.mrf.mxu0 }
 0x107   :  { %v240_v34 = vpop.f32.mrf.mxu1  ;;  %v212_v41 = vpop.f32.mrf.mxu0 }
 0x109   :  { %v242_v36 = vpop.f32.mrf.mxu1  ;;  %v216_v46 = vpop.f32.mrf.mxu0 }
 0x10b   :  { %v246_v37 = vpop.f32.mrf.mxu1  ;;  %v218_v51 = vpop.f32.mrf.mxu0 }
 0x10d   :  { %v248_v39 = vpop.f32.mrf.mxu1  ;;  %v222_v56 = vpop.f32.mrf.mxu0 }
 0x10f   :  { %v335_v40 = vpop.f32.mrf.mxu1  ;;  %v224_v61 = vpop.f32.mrf.mxu0 }
 0x110   :  { %v3491_v42 = vadd.f32 %v335_v40, %v246_v37 }
 0x111   :  { %v337_v43 = vpop.f32.mrf.mxu1 }
 0x112   :  { %v3493_v44 = vadd.f32 %v337_v43, %v248_v39 }
 0x113   :  { %v341_v45 = vpop.f32.mrf.mxu1 }
 0x114   :  { %v3495_v47 = vadd.f32 %v341_v45, %v240_v34  ;;  %v501_v45 = vsub.s32 0, %v3517_v15 }
 0x115   :  { %v343_v48 = vpop.f32.mrf.mxu1 }
 0x116   :  { %v3497_v49 = vadd.f32 %v343_v48, %v242_v36 }
 0x117   :  { %v347_v50 = vpop.f32.mrf.mxu1 }
 0x118   :  { %v3499_v52 = vadd.f32 %v347_v50, %v234_v31 }
 0x119   :  { %v349_v53 = vpop.f32.mrf.mxu1 }
 0x11a   :  { %v3501_v54 = vadd.f32 %v349_v53, %v236_v33  ;;  %v414_v33 = vld [vmem:[#allocation9] sm:$0x3] }
 0x11b   :  { %v353_v55 = vpop.f32.mrf.mxu1  ;;  %v3524_v39 = vrot.slane %v414_v33, %v505_v26 }
 0x11c   :  { %v3503_v57 = vadd.f32 %v353_v55, %v228_v29 }
 0x11d   :  { %v355_v58 = vpop.f32.mrf.mxu1 }
 0x11e   :  { %v3505_v59 = vadd.f32 %v355_v58, %v230_v30  ;;  %v491_v30 = vpop.f32.mrf.mxu0 }
 0x11f   :  { %v359_v60 = vpop.f32.mrf.mxu1 }
 0x120   :  { %v3507_v62 = vadd.f32 %v359_v60, %v222_v56 }
 0x121   :  { %v361_v63 = vpop.f32.mrf.mxu1 }
 0x122   :  { %v3509_v1 = vadd.f32 %v361_v63, %v224_v61 }
 0x123   :  { %v365_v2 = vpop.f32.mrf.mxu1 }
 0x124   :  { %v3511_v3 = vadd.f32 %v365_v2, %v216_v46 }
 0x125   :  { %v367_v5 = vpop.f32.mrf.mxu1 }
 0x126   :  { %v3513_v6 = vadd.f32 %v367_v5, %v218_v51 }
 0x127   :  { %v371_v7 = vpop.f32.mrf.mxu1 }
 0x128   :  { %v3515_v14 = vadd.f32 %v371_v7, %v210_v38  ;;  %v493_v38 = vpop.f32.mrf.mxu0 }
 0x129   :  { %v373_v20 = vpop.f32.mrf.mxu1 }
 0x12a   :  { %v3519_v21 = vadd.f32 %v373_v20, %v212_v41 }
 0x12b   :  { %v377_v29 = vpop.f32.mrf.mxu1 }
 0x12c   :  { %v419_v31 = vadd.f32 %v377_v29, %v204_v32  ;;  %v3531_v32 = vrot.slane %v414_v33, %v501_v45 }
 0x12d   :  { %v379_v34 = vpop.f32.mrf.mxu1 }
 0x12e   :  { %v496_v36 = vadd.f32 %v491_v30, %v419_v31  ;;  %v420_v37 = vadd.f32 %v379_v34, %v206_v35 }
 0x130   :  { %v497_v40 = vadd.f32 %v493_v38, %v420_v37  ;;  %v509_v35 = vadd.f32 %v3531_v32, %v496_v36 }
 0x132   :  { %v510_v43 = vadd.f32 %v3524_v39, %v497_v40  ;;  %v2760_v46 = vmul.f32 -1.442695, %v509_v35 }
 0x134   :  { %2888 = vtanh.f32 %v510_v43  ;;  %v2761_v63 = vmul.f32 -1.442695, %v510_v43 }
 0x135   :  { %2890 = vpow2.f32 %v2760_v46 }
 0x141   :  { %v2889_v41 = vpop.eup %2888 }
 0x142   :  { %526 = vrot.lane.b32.xlu0 %v2889_v41, %s3196_s0  ;;  %v2891_v48 = vpop.eup %2890 }
 0x143   :  { %v517_v50 = vadd.f32 1.0, %v2891_v48 }
 0x145   :  { %2892 = vrcp.f32 %v517_v50 }
 0x152   :  { %v2893_v51 = vpop.eup %2892 }
 0x153   :  { %v524_v56 = vmul.f32 0.0, %v2893_v51 }
 0x1b4   :  { %v527_v53 = vpop.permute.xlu0 %526 }
 0x1b5   :  { %v529_v55 = vmul.f32 %v2893_v51, %v527_v53 }
 0x1b7   :  { %531 = vrot.lane.b32.xlu0 %v529_v55, %s3196_s0 }
 0x229   :  { %v532_v58 = vpop.permute.xlu0 %531 }
 0x22a   :  { %v534_v60 = vadd.f32 %v532_v58, %v524_v56 }
 0x22c   :  { %2894 = vtanh.f32 %v534_v60 }
 0x22d   :  { %2896 = vpow2.f32 %v2761_v63 }
 0x239   :  { %v2895_v61 = vpop.eup %2894 }
 0x23a   :  { %537 = vrot.lane.b32.xlu1 %v2895_v61, %s3196_s0  ;;  %v2897_v2 = vpop.eup %2896 }
 0x23b   :  { %v518_v4 = vadd.f32 1.0, %v2897_v2 }
 0x23d   :  { %2898 = vrcp.f32 %v518_v4 }
 0x24a   :  { %v2899_v5 = vpop.eup %2898 }
 0x2ac   :  { %v538_v7 = vpop.permute.xlu1 %537 }
 0x2ad   :  { %v540_v20 = vmul.f32 %v2899_v5, %v538_v7 }
 0x2af   :  { %542 = vst.msk [vmem:[#allocation2] sm:$0xff] %vm541_vm1, %v540_v20  ;;  %2762 = vmatmul.mubr.msk.f32.vlgmr.msra.gmra.mxu1 %vm421_vm3, %v540_v20 }
 0x2b0   :  { %544 = vst.msk [vmem:[#allocation2 + $0x38] sm:$0xff] %vm543_vm2, %v540_v20  ;;  %803 = vmatpush1.msra.mxu1 %v3311_v9  ;;  %850 = vmatprep.mubr.f32.mxu1 %v3195_v0 }
 0x2b1   :  { %804 = vmatprep.subr.mxu1 %v3316_v10 }
 0x2b2   :  { %805 = vmatpush1.msra.mxu1 %v3323_v11 }
 0x2b3   :  { %806 = vmatprep.subr.mxu1 %v3330_v12 }
 0x2b4   :  { %807 = vmatpush1.msra.mxu1 %v3338_v13 }
 0x2b5   :  { %808 = vmatprep.subr.mxu1 %v3353_v16 }
 0x2b6   :  { %809 = vmatpush1.msra.mxu1 %v3360_v17 }
 0x2b7   :  { %810 = vmatprep.subr.mxu1 %v3367_v18 }
 0x2b8   :  { %811 = vmatpush1.msra.mxu1 %v3375_v19 }
 0x2b9   :  { %812 = vmatprep.subr.mxu1 %v3390_v22 }
 0x2ba   :  { %813 = vmatpush1.msra.mxu1 %v3397_v23 }
 0x2bb   :  { %814 = vmatprep.subr.mxu1 %v3404_v24 }
 0x2bc   :  { %815 = vmatpush1.msra.mxu1 %v3412_v25 }
 0x2bd   :  { %816 = vmatprep.subr.mxu1 %v3422_v27 }
 0x2be   :  { %817 = vmatpush1.msra.mxu1 %v3429_v28 }
 0x2bf   :  { %1034 = vmatprep.subr.mxu1 %v3306_v8 }
 0x36f   :  { %v620_v29 = vpop.f32.mrf.mxu1 }
 0x370   :  { %v625_v30 = vadd.f32 %v620_v29, %v3515_v14 }
 0x371   :  { %v622_v31 = vpop.f32.mrf.mxu1 }
 0x372   :  { %v626_v33 = vadd.f32 %v622_v31, %v3519_v21  ;;  %v627_v37 = vadd.f32 %v625_v30, %v3531_v32 }
 0x374   :  { %v628_v34 = vadd.f32 %v626_v33, %v3524_v39  ;;  %v2763_v38 = vmul.f32 -1.442695, %v627_v37 }
 0x376   :  { %2900 = vtanh.f32 %v628_v34  ;;  %v2764_v51 = vmul.f32 -1.442695, %v628_v34 }
 0x377   :  { %2902 = vpow2.f32 %v2763_v38 }
 0x383   :  { %v2901_v36 = vpop.eup %2900 }
 0x384   :  { %644 = vrot.lane.b32.xlu1 %v2901_v36, %s3196_s0  ;;  %v2903_v40 = vpop.eup %2902 }
 0x385   :  { %v635_v43 = vadd.f32 1.0, %v2903_v40 }
 0x387   :  { %2904 = vrcp.f32 %v635_v43 }
 0x394   :  { %v2905_v41 = vpop.eup %2904 }
 0x395   :  { %v642_v14 = vmul.f32 %v2905_v41, %v534_v60 }
 0x3f6   :  { %v645_v35 = vpop.permute.xlu1 %644 }
 0x3f7   :  { %v647_v46 = vmul.f32 %v2905_v41, %v645_v35 }
 0x3f9   :  { %649 = vrot.lane.b32.xlu0 %v647_v46, %s3196_s0 }
 0x46b   :  { %v650_v21 = vpop.permute.xlu0 %649 }
 0x46c   :  { %v652_v48 = vadd.f32 %v650_v21, %v642_v14 }
 0x46e   :  { %2906 = vtanh.f32 %v652_v48 }
 0x46f   :  { %2908 = vpow2.f32 %v2764_v51 }
 0x47b   :  { %v2907_v50 = vpop.eup %2906 }
 0x47c   :  { %655 = vrot.lane.b32.xlu1 %v2907_v50, %s3196_s0  ;;  %v2909_v53 = vpop.eup %2908 }
 0x47d   :  { %v636_v55 = vadd.f32 1.0, %v2909_v53 }
 0x47f   :  { %2910 = vrcp.f32 %v636_v55 }
 0x48c   :  { %v2911_v56 = vpop.eup %2910 }
 0x4ee   :  { %v656_v58 = vpop.permute.xlu1 %655 }
 0x4ef   :  { %v658_v61 = vmul.f32 %v2911_v56, %v656_v58 }
 0x4f1   :  { %659 = vst.msk [vmem:[#allocation2 + $0x8] sm:$0xff] %vm541_vm1, %v658_v61  ;;  %2765 = vmatmul.mubr.msk.f32.vlgmr.msra.gmra.mxu0 %vm421_vm3, %v658_v61 }
 0x4f2   :  { %660 = vst.msk [vmem:[#allocation2 + $0x30] sm:$0xff] %vm543_vm2, %v658_v61  ;;  %919 = vmatpush1.msra.mxu0 %v3311_v9  ;;  %966 = vmatprep.mubr.f32.mxu0 %v3195_v0 }
 0x4f3   :  { %920 = vmatprep.subr.mxu0 %v3316_v10 }
 0x4f4   :  { %921 = vmatpush1.msra.mxu0 %v3323_v11 }
 0x4f5   :  { %922 = vmatprep.subr.mxu0 %v3330_v12 }
 0x4f6   :  { %923 = vmatpush1.msra.mxu0 %v3338_v13 }
 0x4f7   :  { %924 = vmatprep.subr.mxu0 %v3353_v16 }
 0x4f8   :  { %925 = vmatpush1.msra.mxu0 %v3360_v17 }
 0x4f9   :  { %926 = vmatprep.subr.mxu0 %v3367_v18 }
 0x4fa   :  { %927 = vmatpush1.msra.mxu0 %v3375_v19 }
 0x4fb   :  { %928 = vmatprep.subr.mxu0 %v3390_v22 }
 0x4fc   :  { %929 = vmatpush1.msra.mxu0 %v3397_v23 }
 0x4fd   :  { %930 = vmatprep.subr.mxu0 %v3404_v24 }
 0x4fe   :  { %931 = vmatpush1.msra.mxu0 %v3412_v25 }
 0x4ff   :  { %932 = vmatprep.subr.mxu0 %v3422_v27 }
 0x500   :  { %933 = vmatpush1.msra.mxu0 %v3429_v28 }
 0x501   :  { %1150 = vmatprep.subr.mxu0 %v3306_v8 }
 0x5b1   :  { %v736_v60 = vpop.f32.mrf.mxu0 }
 0x5b2   :  { %v741_v63 = vadd.f32 %v736_v60, %v3511_v3 }
 0x5b3   :  { %v738_v2 = vpop.f32.mrf.mxu0 }
 0x5b4   :  { %v742_v4 = vadd.f32 %v738_v2, %v3513_v6  ;;  %v743_v20 = vadd.f32 %v741_v63, %v3531_v32 }
 0x5b6   :  { %v744_v5 = vadd.f32 %v742_v4, %v3524_v39  ;;  %v2766_v29 = vmul.f32 -1.442695, %v743_v20 }
 0x5b8   :  { %2912 = vtanh.f32 %v744_v5  ;;  %v2767_v40 = vmul.f32 -1.442695, %v744_v5 }
 0x5b9   :  { %2914 = vpow2.f32 %v2766_v29 }
 0x5c5   :  { %v2913_v7 = vpop.eup %2912 }
 0x5c6   :  { %760 = vrot.lane.b32.xlu0 %v2913_v7, %s3196_s0  ;;  %v2915_v30 = vpop.eup %2914 }
 0x5c7   :  { %v751_v31 = vadd.f32 1.0, %v2915_v30 }
 0x5c9   :  { %2916 = vrcp.f32 %v751_v31 }
 0x5d6   :  { %v2917_v33 = vpop.eup %2916 }
 0x5d7   :  { %v758_v3 = vmul.f32 %v2917_v33, %v652_v48 }
 0x638   :  { %v761_v34 = vpop.permute.xlu0 %760 }
 0x639   :  { %v763_v36 = vmul.f32 %v2917_v33, %v761_v34 }
 0x63b   :  { %765 = vrot.lane.b32.xlu1 %v763_v36, %s3196_s0 }
 0x6ad   :  { %v766_v6 = vpop.permute.xlu1 %765 }
 0x6ae   :  { %v768_v37 = vadd.f32 %v766_v6, %v758_v3 }
 0x6b0   :  { %2918 = vtanh.f32 %v768_v37 }
 0x6b1   :  { %2920 = vpow2.f32 %v2767_v40 }
 0x6bd   :  { %v2919_v38 = vpop.eup %2918 }
 0x6be   :  { %771 = vrot.lane.b32.xlu0 %v2919_v38, %s3196_s0  ;;  %v2921_v43 = vpop.eup %2920 }
 0x6bf   :  { %v752_v41 = vadd.f32 1.0, %v2921_v43 }
 0x6c1   :  { %2922 = vrcp.f32 %v752_v41 }
 0x6ce   :  { %v2923_v35 = vpop.eup %2922 }
 0x730   :  { %v772_v46 = vpop.permute.xlu0 %771 }
 0x731   :  { %v774_v14 = vmul.f32 %v2923_v35, %v772_v46 }
 0x733   :  { %775 = vst.msk [vmem:[#allocation2 + $0x10] sm:$0xff] %vm541_vm1, %v774_v14  ;;  %2768 = vmatmul.mubr.msk.f32.vlgmr.msra.gmra.mxu1 %vm421_vm3, %v774_v14 }
 0x734   :  { %776 = vst.msk [vmem:[#allocation2 + $0x28] sm:$0xff] %vm543_vm2, %v774_v14  ;;  %1035 = vmatpush1.msra.mxu1 %v3311_v9  ;;  %1082 = vmatprep.mubr.f32.mxu1 %v3195_v0 }
 0x735   :  { %1036 = vmatprep.subr.mxu1 %v3316_v10 }
 0x736   :  { %1037 = vmatpush1.msra.mxu1 %v3323_v11 }
 0x737   :  { %1038 = vmatprep.subr.mxu1 %v3330_v12 }
 0x738   :  { %1039 = vmatpush1.msra.mxu1 %v3338_v13 }
 0x739   :  { %1040 = vmatprep.subr.mxu1 %v3353_v16 }
 0x73a   :  { %1041 = vmatpush1.msra.mxu1 %v3360_v17 }
 0x73b   :  { %1042 = vmatprep.subr.mxu1 %v3367_v18 }
 0x73c   :  { %1043 = vmatpush1.msra.mxu1 %v3375_v19 }
 0x73d   :  { %1044 = vmatprep.subr.mxu1 %v3390_v22 }
 0x73e   :  { %1045 = vmatpush1.msra.mxu1 %v3397_v23 }
 0x73f   :  { %1046 = vmatprep.subr.mxu1 %v3404_v24 }
 0x740   :  { %1047 = vmatpush1.msra.mxu1 %v3412_v25 }
 0x741   :  { %1048 = vmatprep.subr.mxu1 %v3422_v27 }
 0x742   :  { %1049 = vmatpush1.msra.mxu1 %v3429_v28 }
 0x743   :  { %1266 = vmatprep.subr.mxu1 %v3306_v8 }
 0x7f3   :  { %v852_v21 = vpop.f32.mrf.mxu1 }
 0x7f4   :  { %v857_v48 = vadd.f32 %v852_v21, %v3507_v62 }
 0x7f5   :  { %v854_v50 = vpop.f32.mrf.mxu1 }
 0x7f6   :  { %v858_v51 = vadd.f32 %v854_v50, %v3509_v1  ;;  %v859_v56 = vadd.f32 %v857_v48, %v3531_v32 }
 0x7f8   :  { %v860_v53 = vadd.f32 %v858_v51, %v3524_v39  ;;  %v2769_v58 = vmul.f32 -1.442695, %v859_v56 }
 0x7fa   :  { %2924 = vtanh.f32 %v860_v53  ;;  %v2770_v7 = vmul.f32 -1.442695, %v860_v53 }
 0x7fb   :  { %2926 = vpow2.f32 %v2769_v58 }
 0x807   :  { %v2925_v55 = vpop.eup %2924 }
 0x808   :  { %876 = vrot.lane.b32.xlu1 %v2925_v55, %s3196_s0  ;;  %v2927_v61 = vpop.eup %2926 }
 0x809   :  { %v867_v60 = vadd.f32 1.0, %v2927_v61 }
 0x80b   :  { %2928 = vrcp.f32 %v867_v60 }
 0x818   :  { %v2929_v8 = vpop.eup %2928 }
 0x819   :  { %v874_v62 = vmul.f32 %v2929_v8, %v768_v37 }
 0x87a   :  { %v877_v63 = vpop.permute.xlu1 %876 }
 0x87b   :  { %v879_v2 = vmul.f32 %v2929_v8, %v877_v63 }
 0x87d   :  { %881 = vrot.lane.b32.xlu0 %v879_v2, %s3196_s0 }
 0x8ef   :  { %v882_v1 = vpop.permute.xlu0 %881 }
 0x8f0   :  { %v884_v4 = vadd.f32 %v882_v1, %v874_v62 }
 0x8f2   :  { %2930 = vtanh.f32 %v884_v4 }
 0x8f3   :  { %2932 = vpow2.f32 %v2770_v7 }
 0x8ff   :  { %v2931_v5 = vpop.eup %2930 }
 0x900   :  { %887 = vrot.lane.b32.xlu1 %v2931_v5, %s3196_s0  ;;  %v2933_v20 = vpop.eup %2932 }
 0x901   :  { %v868_v29 = vadd.f32 1.0, %v2933_v20 }
 0x903   :  { %2934 = vrcp.f32 %v868_v29 }
 0x910   :  { %v2935_v30 = vpop.eup %2934 }
 0x972   :  { %v888_v31 = vpop.permute.xlu1 %887 }
 0x973   :  { %v890_v33 = vmul.f32 %v2935_v30, %v888_v31 }
 0x975   :  { %891 = vst.msk [vmem:[#allocation2 + $0x18] sm:$0xff] %vm541_vm1, %v890_v33  ;;  %2771 = vmatmul.mubr.msk.f32.vlgmr.msra.gmra.mxu0 %vm421_vm3, %v890_v33 }
 0x976   :  { %892 = vst.msk [vmem:[#allocation2 + $0x20] sm:$0xff] %vm543_vm2, %v890_v33  ;;  %1151 = vmatpush1.msra.mxu0 %v3311_v9  ;;  %1198 = vmatprep.mubr.f32.mxu0 %v3195_v0 }
 0x977   :  { %1152 = vmatprep.subr.mxu0 %v3316_v10 }
 0x978   :  { %1153 = vmatpush1.msra.mxu0 %v3323_v11 }
 0x979   :  { %1154 = vmatprep.subr.mxu0 %v3330_v12 }
 0x97a   :  { %1155 = vmatpush1.msra.mxu0 %v3338_v13 }
 0x97b   :  { %1156 = vmatprep.subr.mxu0 %v3353_v16 }
 0x97c   :  { %1157 = vmatpush1.msra.mxu0 %v3360_v17 }
 0x97d   :  { %1158 = vmatprep.subr.mxu0 %v3367_v18 }
 0x97e   :  { %1159 = vmatpush1.msra.mxu0 %v3375_v19 }
 0x97f   :  { %1160 = vmatprep.subr.mxu0 %v3390_v22 }
 0x980   :  { %1161 = vmatpush1.msra.mxu0 %v3397_v23 }
 0x981   :  { %1162 = vmatprep.subr.mxu0 %v3404_v24 }
 0x982   :  { %1163 = vmatpush1.msra.mxu0 %v3412_v25 }
 0x983   :  { %1164 = vmatprep.subr.mxu0 %v3422_v27 }
 0x984   :  { %1165 = vmatpush1.msra.mxu0 %v3429_v28 }
 0xa35   :  { %v968_v34 = vpop.f32.mrf.mxu0 }
 0xa36   :  { %v973_v36 = vadd.f32 %v968_v34, %v3503_v57 }
 0xa37   :  { %v970_v3 = vpop.f32.mrf.mxu0 }
 0xa38   :  { %v974_v6 = vadd.f32 %v970_v3, %v3505_v59  ;;  %v975_v40 = vadd.f32 %v973_v36, %v3531_v32 }
 0xa3a   :  { %v976_v37 = vadd.f32 %v974_v6, %v3524_v39  ;;  %v2772_v43 = vmul.f32 -1.442695, %v975_v40 }
 0xa3c   :  { %2936 = vtanh.f32 %v976_v37  ;;  %v2773_v51 = vmul.f32 -1.442695, %v976_v37 }
 0xa3d   :  { %2938 = vpow2.f32 %v2772_v43 }
 0xa49   :  { %v2937_v38 = vpop.eup %2936 }
 0xa4a   :  { %992 = vrot.lane.b32.xlu0 %v2937_v38, %s3196_s0  ;;  %v2939_v41 = vpop.eup %2938 }
 0xa4b   :  { %v983_v35 = vadd.f32 1.0, %v2939_v41 }
 0xa4d   :  { %2940 = vrcp.f32 %v983_v35 }
 0xa5a   :  { %v2941_v46 = vpop.eup %2940 }
 0xa5b   :  { %v990_v57 = vmul.f32 %v2941_v46, %v884_v4 }
 0xabc   :  { %v993_v14 = vpop.permute.xlu0 %992 }
 0xabd   :  { %v995_v21 = vmul.f32 %v2941_v46, %v993_v14 }
 0xabf   :  { %997 = vrot.lane.b32.xlu1 %v995_v21, %s3196_s0 }
 0xb31   :  { %v998_v59 = vpop.permute.xlu1 %997 }
 0xb32   :  { %v1000_v48 = vadd.f32 %v998_v59, %v990_v57 }
 0xb34   :  { %2942 = vtanh.f32 %v1000_v48 }
 0xb35   :  { %2944 = vpow2.f32 %v2773_v51 }
 0xb41   :  { %v2943_v50 = vpop.eup %2942 }
 0xb42   :  { %1003 = vrot.lane.b32.xlu0 %v2943_v50, %s3196_s0  ;;  %v2945_v53 = vpop.eup %2944 }
 0xb43   :  { %v984_v55 = vadd.f32 1.0, %v2945_v53 }
 0xb45   :  { %2946 = vrcp.f32 %v984_v55 }
 0xb52   :  { %v2947_v56 = vpop.eup %2946 }
 0xbb4   :  { %v1004_v58 = vpop.permute.xlu0 %1003 }
 0xbb5   :  { %v1006_v61 = vmul.f32 %v2947_v56, %v1004_v58 }
 0xbb7   :  { %1007 = vst.msk [vmem:[#allocation2 + $0x20] sm:$0xff] %vm541_vm1, %v1006_v61  ;;  %2774 = vmatmul.mubr.msk.f32.vlgmr.msra.gmra.mxu1 %vm421_vm3, %v1006_v61 }
 0xbb8   :  { %1008 = vst.msk [vmem:[#allocation2 + $0x18] sm:$0xff] %vm543_vm2, %v1006_v61  ;;  %1267 = vmatpush1.msra.mxu1 %v3311_v9  ;;  %1314 = vmatprep.mubr.f32.mxu1 %v3195_v0 }
 0xbb9   :  { %1268 = vmatprep.subr.mxu1 %v3316_v10 }
 0xbba   :  { %1269 = vmatpush1.msra.mxu1 %v3323_v11 }
 0xbbb   :  { %1270 = vmatprep.subr.mxu1 %v3330_v12 }
 0xbbc   :  { %1271 = vmatpush1.msra.mxu1 %v3338_v13 }
 0xbbd   :  { %1272 = vmatprep.subr.mxu1 %v3353_v16 }
 0xbbe   :  { %1273 = vmatpush1.msra.mxu1 %v3360_v17 }
 0xbbf   :  { %1274 = vmatprep.subr.mxu1 %v3367_v18 }
 0xbc0   :  { %1275 = vmatpush1.msra.mxu1 %v3375_v19 }
 0xbc1   :  { %1276 = vmatprep.subr.mxu1 %v3390_v22 }
 0xbc2   :  { %1277 = vmatpush1.msra.mxu1 %v3397_v23 }
 0xbc3   :  { %1278 = vmatprep.subr.mxu1 %v3404_v24 }
 0xbc4   :  { %1279 = vmatpush1.msra.mxu1 %v3412_v25 }
 0xbc5   :  { %1280 = vmatprep.subr.mxu1 %v3422_v27 }
 0xbc6   :  { %1281 = vmatpush1.msra.mxu1 %v3429_v28 }
 0xc77   :  { %v1084_v9 = vpop.f32.mrf.mxu1 }
 0xc78   :  { %v1089_v10 = vadd.f32 %v1084_v9, %v3499_v52 }
 0xc79   :  { %v1086_v11 = vpop.f32.mrf.mxu1 }
 0xc7a   :  { %v1090_v12 = vadd.f32 %v1086_v11, %v3501_v54  ;;  %v1091_v17 = vadd.f32 %v1089_v10, %v3531_v32  ;;  %v1379_v11 = vld [vmem:[%s4137_s5 + $0x70] sm:$0xff] }
 0xc7c   :  { %v1092_v13 = vadd.f32 %v1090_v12, %v3524_v39  ;;  %v2775_v18 = vmul.f32 -1.442695, %v1091_v17  ;;  %v1378_v12 = vld [vmem:[%s4137_s5 + $0x68] sm:$0xff] }
 0xc7d   :  { %v1546_v17 = vld [vmem:[#allocation10 + $0x60] sm:$0xff] }
 0xc7e   :  { %2948 = vtanh.f32 %v1092_v13  ;;  %v2776_v60 = vmul.f32 -1.442695, %v1092_v13  ;;  %v1547_v13 = vld [vmem:[#allocation10 + $0x68] sm:$0xff] }
 0xc7f   :  { %2950 = vpow2.f32 %v2775_v18  ;;  %v1376_v18 = vld [vmem:[%s4137_s5 + $0x58] sm:$0xff] }
 0xc8b   :  { %v2949_v16 = vpop.eup %2948 }
 0xc8c   :  { %1108 = vrot.lane.b32.xlu1 %v2949_v16, %s3196_s0  ;;  %v2951_v19 = vpop.eup %2950  ;;  %v1377_v16 = vld [vmem:[%s4137_s5 + $0x60] sm:$0xff] }
 0xc8d   :  { %v1099_v22 = vadd.f32 1.0, %v2951_v19  ;;  %v1545_v19 = vld [vmem:[#allocation10 + $0x58] sm:$0xff] }
 0xc8f   :  { %2952 = vrcp.f32 %v1099_v22  ;;  %v1375_v22 = vld [vmem:[%s4137_s5 + $0x50] sm:$0xff] }
 0xc9c   :  { %v2953_v23 = vpop.eup %2952 }
 0xc9d   :  { %v1106_v27 = vmul.f32 %v2953_v23, %v1000_v48 }
 0xcfe   :  { %v1109_v24 = vpop.permute.xlu1 %1108 }
 0xcff   :  { %v1111_v25 = vmul.f32 %v2953_v23, %v1109_v24  ;;  %v1544_v23 = vld [vmem:[#allocation10 + $0x50] sm:$0xff] }
 0xd01   :  { %1113 = vrot.lane.b32.xlu0 %v1111_v25, %s3196_s0 }
 0xd73   :  { %v1114_v28 = vpop.permute.xlu0 %1113 }
 0xd74   :  { %v1116_v52 = vadd.f32 %v1114_v28, %v1106_v27  ;;  %v1374_v28 = vld [vmem:[%s4137_s5 + $0x48] sm:$0xff] }
 0xd76   :  { %2954 = vtanh.f32 %v1116_v52 }
 0xd77   :  { %2956 = vpow2.f32 %v2776_v60  ;;  %v1542_v60 = vld [vmem:[#allocation10 + $0x40] sm:$0xff] }
 0xd83   :  { %v2955_v54 = vpop.eup %2954 }
 0xd84   :  { %1119 = vrot.lane.b32.xlu1 %v2955_v54, %s3196_s0  ;;  %v2957_v8 = vpop.eup %2956  ;;  %v1373_v54 = vld [vmem:[%s4137_s5 + $0x40] sm:$0xff] }
 0xd85   :  { %v1100_v63 = vadd.f32 1.0, %v2957_v8  ;;  %v1372_v8 = vld [vmem:[%s4137_s5 + $0x38] sm:$0xff] }
 0xd87   :  { %2958 = vrcp.f32 %v1100_v63  ;;  %v1541_v63 = vld [vmem:[#allocation10 + $0x38] sm:$0xff] }
 0xd94   :  { %v2959_v2 = vpop.eup %2958 }
 0xdf6   :  { %v1120_v62 = vpop.permute.xlu1 %1119 }
 0xdf7   :  { %v1122_v1 = vmul.f32 %v2959_v2, %v1120_v62  ;;  %v1371_v2 = vld [vmem:[%s4137_s5 + $0x30] sm:$0xff] }
 0xdf8   :  { %v1540_v62 = vld [vmem:[#allocation10 + $0x30] sm:$0xff] }
 0xdf9   :  { %1123 = vst.msk [vmem:[#allocation2 + $0x28] sm:$0xff] %vm541_vm1, %v1122_v1  ;;  %2777 = vmatmul.mubr.msk.f32.vlgmr.msra.gmra.mxu0 %vm421_vm3, %v1122_v1 }
 0xdfa   :  { %1124 = vst.msk [vmem:[#allocation2 + $0x10] sm:$0xff] %vm543_vm2, %v1122_v1  ;;  %1469 = vmatprep.mubr.f32.mxu0 %v3195_v0  ;;  %v1370_v1 = vld [vmem:[%s4137_s5 + $0x28] sm:$0xff] }
 0xeb9   :  { %v1200_v4 = vpop.f32.mrf.mxu0 }
 0xeba   :  { %v1205_v5 = vadd.f32 %v1200_v4, %v3495_v47  ;;  %v1539_v4 = vld [vmem:[#allocation10 + $0x28] sm:$0xff] }
 0xebb   :  { %v1202_v7 = vpop.f32.mrf.mxu0 }
 0xebc   :  { %v1206_v20 = vadd.f32 %v1202_v7, %v3497_v49  ;;  %v1207_v31 = vadd.f32 %v1205_v5, %v3531_v32  ;;  %v1369_v5 = vld [vmem:[%s4137_s5 + $0x20] sm:$0xff] }
 0xebd   :  { %v1538_v7 = vld [vmem:[#allocation10 + $0x20] sm:$0xff] }
 0xebe   :  { %v1208_v29 = vadd.f32 %v1206_v20, %v3524_v39  ;;  %v2778_v33 = vmul.f32 -1.442695, %v1207_v31  ;;  %v1368_v20 = vld [vmem:[%s4137_s5 + $0x18] sm:$0xff] }
 0xebf   :  { %v1536_v31 = vld [vmem:[#allocation10 + $0x10] sm:$0xff] }
 0xec0   :  { %2960 = vtanh.f32 %v1208_v29  ;;  %v2779_v43 = vmul.f32 -1.442695, %v1208_v29  ;;  %v1537_v29 = vld [vmem:[#allocation10 + $0x18] sm:$0xff] }
 0xec1   :  { %2962 = vpow2.f32 %v2778_v33  ;;  %v1366_v33 = vld [vmem:[%s4137_s5 + $0x8] sm:$0xff] }
 0xecd   :  { %v2961_v30 = vpop.eup %2960 }
 0xece   :  { %1224 = vrot.lane.b32.xlu0 %v2961_v30, %s3196_s0  ;;  %v2963_v34 = vpop.eup %2962  ;;  %v1367_v30 = vld [vmem:[%s4137_s5 + $0x10] sm:$0xff] }
 0xecf   :  { %v1215_v36 = vadd.f32 1.0, %v2963_v34  ;;  %v1535_v34 = vld [vmem:[#allocation10 + $0x8] sm:$0xff] }
 0xed1   :  { %2964 = vrcp.f32 %v1215_v36  ;;  %v1365_v36 = vld [vmem:[%s4137_s5] sm:$0xff] }
 0xede   :  { %v2965_v3 = vpop.eup %2964 }
 0xedf   :  { %v1222_v47 = vmul.f32 %v2965_v3, %v1116_v52  ;;  %v1543_v52 = vld [vmem:[#allocation10 + $0x48] sm:$0xff] }
 0xf40   :  { %v1225_v6 = vpop.permute.xlu0 %1224 }
 0xf41   :  { %v1227_v37 = vmul.f32 %v2965_v3, %v1225_v6  ;;  %v1534_v3 = vld [vmem:[#allocation10] sm:$0xff]  ;;  %v3741_v6 = vld [vmem:[#allocation12 + $0x78] sm:$0xff] }
 0xf43   :  { %1229 = vrot.lane.b32.xlu1 %v1227_v37, %s3196_s0 }
 0xfb5   :  { %v1230_v49 = vpop.permute.xlu1 %1229 }
 0xfb6   :  { %v1232_v38 = vadd.f32 %v1230_v49, %v1222_v47 }
 0xfb8   :  { %2966 = vtanh.f32 %v1232_v38 }
 0xfb9   :  { %2968 = vpow2.f32 %v2779_v43 }
 0xfc5   :  { %v2967_v40 = vpop.eup %2966 }
 0xfc6   :  { %1235 = vrot.lane.b32.xlu0 %v2967_v40, %s3196_s0  ;;  %v2969_v41 = vpop.eup %2968 }
 0xfc7   :  { %v1216_v35 = vadd.f32 1.0, %v2969_v41 }
 0xfc9   :  { %2970 = vrcp.f32 %v1216_v35  ;;  %v3753_v35 = vld [vmem:[#allocation12 + $0x70] sm:$0xff] }
 0xfd6   :  { %v2971_v46 = vpop.eup %2970 }
0x1038   :  { %v1236_v14 = vpop.permute.xlu0 %1235 }
0x1039   :  { %v1238_v21 = vmul.f32 %v2971_v46, %v1236_v14  ;;  %v3755_v14 = vld [vmem:[#allocation12 + $0x68] sm:$0xff] }
0x103b   :  { %1239 = vst.msk [vmem:[#allocation2 + $0x30] sm:$0xff] %vm541_vm1, %v1238_v21  ;;  %2780 = vmatmul.mubr.msk.f32.vlgmr.msra.gmra.mxu1 %vm421_vm3, %v1238_v21 }
0x103c   :  { %1240 = vst.msk [vmem:[#allocation2 + $0x8] sm:$0xff] %vm543_vm2, %v1238_v21  ;;  %1614 = vmatprep.mubr.f32.mxu1 %v3195_v0  ;;  %v3759_v21 = vld [vmem:[#allocation12 + $0x60] sm:$0xff] }
0x10fb   :  { %v1316_v57 = vpop.f32.mrf.mxu1 }
0x10fc   :  { %v1321_v59 = vadd.f32 %v1316_v57, %v3491_v42  ;;  %v1358_v57 = vld [vmem:[#allocation2 + $0x8] sm:$0xff] }
0x10fd   :  { %v1318_v48 = vpop.f32.mrf.mxu1 }
0x10fe   :  { %v1322_v50 = vadd.f32 %v1318_v48, %v3493_v44  ;;  %v1323_v55 = vadd.f32 %v1321_v59, %v3531_v32  ;;  %v1380_v44 = vld [vmem:[%s4137_s5 + $0x78] sm:$0xff] }
0x10ff   :  { %1421 = vmatprep.subr.mxu0 %v1380_v44  ;;  %v1548_v32 = vld [vmem:[#allocation10 + $0x70] sm:$0xff]  ;;  %v3766_v59 = vld [vmem:[#allocation12 + $0x58] sm:$0xff] }
0x1100   :  { %v3687_v51 = vadd.f32 %v1322_v50, %v3524_v39  ;;  %v2781_v56 = vmul.f32 -1.442695, %v1323_v55  ;;  %v1549_v39 = vld [vmem:[#allocation10 + $0x78] sm:$0xff]  ;;  %1422 = vmatpush1.msra.mxu0 %v1379_v11  ;;  %v3771_v48 = vld [vmem:[#allocation12 + $0x50] sm:$0xff] }
0x1101   :  { %1566 = vmatprep.subr.mxu1 %v1549_v39  ;;  %1423 = vmatprep.subr.mxu0 %v1378_v12  ;;  %v1359_v50 = vld [vmem:[#allocation2 + $0x10] sm:$0xff]  ;;  %v1360_v55 = vld [vmem:[#allocation2 + $0x18] sm:$0xff]  ;;  %v3831_v12 = vld [vmem:[#allocation12] sm:$0xff] }
0x1102   :  { %2972 = vtanh.f32 %v3687_v51  ;;  %1567 = vmatpush1.msra.mxu1 %v1548_v32  ;;  %1424 = vmatpush1.msra.mxu0 %v1377_v16  ;;  %v2782_v47 = vmul.f32 -1.442695, %v3687_v51  ;;  %v3778_v51 = vld [vmem:[#allocation12 + $0x48] sm:$0xff]  ;;  %v3814_v44 = vld [vmem:[#allocation12 + $0x18] sm:$0xff]  ;;  %v3819_v39 = vld [vmem:[#allocation12 + $0x10] sm:$0xff] }
0x1103   :  { %2974 = vpow2.f32 %v2781_v56  ;;  %1568 = vmatprep.subr.mxu1 %v1547_v13  ;;  %1425 = vmatprep.subr.mxu0 %v1376_v18  ;;  %v3790_v56 = vld [vmem:[#allocation12 + $0x38] sm:$0xff]  ;;  %v1363_v11 = vld [vmem:[#allocation2 + $0x30] sm:$0xff] }
0x1104   :  { %1569 = vmatpush1.msra.mxu1 %v1546_v17  ;;  %1426 = vmatpush1.msra.mxu0 %v1375_v22  ;;  %v3826_v32 = vld [vmem:[#allocation12 + $0x8] sm:$0xff] }
0x1105   :  { %1570 = vmatprep.subr.mxu1 %v1545_v19  ;;  %1427 = vmatprep.subr.mxu0 %v1374_v28 }
0x1106   :  { %1571 = vmatpush1.msra.mxu1 %v1544_v23  ;;  %1428 = vmatpush1.msra.mxu0 %v1373_v54 }
0x1107   :  { %1572 = vmatprep.subr.mxu1 %v1543_v52  ;;  %1429 = vmatprep.subr.mxu0 %v1372_v8 }
0x1108   :  { %1573 = vmatpush1.msra.mxu1 %v1542_v60  ;;  %1430 = vmatpush1.msra.mxu0 %v1371_v2 }
0x1109   :  { %1574 = vmatprep.subr.mxu1 %v1541_v63  ;;  %1431 = vmatprep.subr.mxu0 %v1370_v1 }
0x110a   :  { %1575 = vmatpush1.msra.mxu1 %v1540_v62  ;;  %1432 = vmatpush1.msra.mxu0 %v1369_v5 }
0x110b   :  { %1576 = vmatprep.subr.mxu1 %v1539_v4  ;;  %1433 = vmatprep.subr.mxu0 %v1368_v20 }
0x110c   :  { %1577 = vmatpush1.msra.mxu1 %v1538_v7  ;;  %1434 = vmatpush1.msra.mxu0 %v1367_v30 }
0x110d   :  { %1578 = vmatprep.subr.mxu1 %v1537_v29  ;;  %1435 = vmatprep.subr.mxu0 %v1366_v33 }
0x110e   :  { %1579 = vmatpush1.msra.mxu1 %v1536_v31  ;;  %1436 = vmatpush1.msra.mxu0 %v1365_v36 }
0x110f   :  { %v2973_v53 = vpop.eup %2972  ;;  %1580 = vmatprep.subr.mxu1 %v1535_v34  ;;  %1718 = vmatprep.subr.mxu0 %v3741_v6 }
0x1110   :  { %1340 = vrot.lane.b32.xlu1 %v2973_v53, %s3196_s0  ;;  %v2975_v58 = vpop.eup %2974  ;;  %1581 = vmatpush1.msra.mxu1 %v1534_v3  ;;  %v3783_v53 = vld [vmem:[#allocation12 + $0x40] sm:$0xff] }
0x1111   :  { %v1331_v61 = vadd.f32 1.0, %v2975_v58  ;;  %1843 = vmatprep.subr.mxu1 %v3741_v6  ;;  %v3795_v58 = vld [vmem:[#allocation12 + $0x30] sm:$0xff] }
0x1113   :  { %2976 = vrcp.f32 %v1331_v61  ;;  %v1361_v61 = vld [vmem:[#allocation2 + $0x20] sm:$0xff] }
0x1120   :  { %v2977_v9 = vpop.eup %2976 }
0x1121   :  { %v1338_v24 = vmul.f32 %v2977_v9, %v1232_v38 }
0x1182   :  { %v1341_v42 = vpop.permute.xlu1 %1340 }
0x1183   :  { %v1343_v10 = vmul.f32 %v2977_v9, %v1341_v42  ;;  %v3802_v9 = vld [vmem:[#allocation12 + $0x28] sm:$0xff]  ;;  %v3807_v42 = vld [vmem:[#allocation12 + $0x20] sm:$0xff] }
0x1185   :  { %1345 = vrot.lane.b32.xlu0 %v1343_v10, %s3196_s0  ;;  %v1362_v10 = vld [vmem:[#allocation2 + $0x28] sm:$0xff] }
0x11f7   :  { %v1346_v25 = vpop.permute.xlu0 %1345 }
0x11f8   :  { %v1348_v27 = vadd.f32 %v1346_v25, %v1338_v24 }
0x11fa   :  { %2978 = vtanh.f32 %v1348_v27 }
0x11fb   :  { %2980 = vpow2.f32 %v2782_v47 }
0x1207   :  { %v2979_v37 = vpop.eup %2978 }
0x1208   :  { %1351 = vrot.lane.b32.xlu1 %v2979_v37, %s3196_s0  ;;  %v2981_v49 = vpop.eup %2980 }
0x1209   :  { %v1332_v38 = vadd.f32 1.0, %v2981_v49 }
0x120b   :  { %2982 = vrcp.f32 %v1332_v38 }
0x1218   :  { %v2983_v40 = vpop.eup %2982 }
0x127a   :  { %v1352_v43 = vpop.permute.xlu1 %1351 }
0x127b   :  { %v3747_v41 = vmul.f32 %v2983_v40, %v1352_v43 }
0x127d   :  { %1355 = vst.msk [vmem:[#allocation2 + $0x38] sm:$0xff] %vm541_vm1, %v3747_v41 }
0x127e   :  { %1356 = vst.msk [vmem:[#allocation2] sm:$0xff] %vm543_vm2, %v3747_v41 }
0x1284   :  { %v1364_v13 = vld [vmem:[#allocation2 + $0x38] sm:$0xff] }
0x1285   :  { %v1357_v46 = vld [vmem:[#allocation2] sm:$0xff] }
0x1286   :  { %2783 = vmatmul.mubr.msk.f32.vlgmr.msra.gmra.mxu0 %vm421_vm3, %v1357_v46  ;;  %2791 = vmatmul.mubr.msk.f32.vlgmr.msra.gmra.mxu1 %vm421_vm3, %v1357_v46 }
0x1287   :  { %1719 = vmatpush1.msra.mxu0 %v3753_v35  ;;  %1475 = vmatprep.mubr.f32.mxu0 %v3195_v0 }
0x1288   :  { %1620 = vmatprep.mubr.f32.mxu1 %v3195_v0  ;;  %1720 = vmatprep.subr.mxu0 %v3755_v14 }
0x1289   :  { %1721 = vmatpush1.msra.mxu0 %v3759_v21  ;;  %1844 = vmatpush1.msra.mxu1 %v3753_v35 }
0x128a   :  { %2784 = vmatmul.mubr.msk.f32.gmra.mxu0 %vm421_vm3, %v1358_v57  ;;  %2792 = vmatmul.mubr.msk.f32.gmra.mxu1 %vm421_vm3, %v1358_v57 }
0x128b   :  { %1481 = vmatprep.mubr.f32.mxu0 %v3195_v0  ;;  %1626 = vmatprep.mubr.f32.mxu1 %v3195_v0 }
0x128c   :  { %1722 = vmatprep.subr.mxu0 %v3766_v59  ;;  %1845 = vmatprep.subr.mxu1 %v3755_v14 }
0x128d   :  { %1723 = vmatpush1.msra.mxu0 %v3771_v48  ;;  %1846 = vmatpush1.msra.mxu1 %v3759_v21 }
0x128e   :  { %2785 = vmatmul.mubr.msk.f32.gmra.mxu0 %vm421_vm3, %v1359_v50  ;;  %2793 = vmatmul.mubr.msk.f32.gmra.mxu1 %vm421_vm3, %v1359_v50 }
0x128f   :  { %1487 = vmatprep.mubr.f32.mxu0 %v3195_v0  ;;  %1632 = vmatprep.mubr.f32.mxu1 %v3195_v0 }
0x1290   :  { %1724 = vmatprep.subr.mxu0 %v3778_v51  ;;  %1847 = vmatprep.subr.mxu1 %v3766_v59 }
0x1291   :  { %1725 = vmatpush1.msra.mxu0 %v3783_v53  ;;  %1848 = vmatpush1.msra.mxu1 %v3771_v48 }
0x1292   :  { %2786 = vmatmul.mubr.msk.f32.gmra.mxu0 %vm421_vm3, %v1360_v55  ;;  %2794 = vmatmul.mubr.msk.f32.gmra.mxu1 %vm421_vm3, %v1360_v55 }
0x1293   :  { %1493 = vmatprep.mubr.f32.mxu0 %v3195_v0  ;;  %1638 = vmatprep.mubr.f32.mxu1 %v3195_v0 }
0x1294   :  { %1726 = vmatprep.subr.mxu0 %v3790_v56  ;;  %1849 = vmatprep.subr.mxu1 %v3778_v51 }
0x1295   :  { %1727 = vmatpush1.msra.mxu0 %v3795_v58  ;;  %1850 = vmatpush1.msra.mxu1 %v3783_v53 }
0x1296   :  { %2787 = vmatmul.mubr.msk.f32.gmra.mxu0 %vm421_vm3, %v1361_v61  ;;  %2795 = vmatmul.mubr.msk.f32.gmra.mxu1 %vm421_vm3, %v1361_v61 }
0x1297   :  { %1499 = vmatprep.mubr.f32.mxu0 %v3195_v0  ;;  %1644 = vmatprep.mubr.f32.mxu1 %v3195_v0 }
0x1298   :  { %1728 = vmatprep.subr.mxu0 %v3802_v9  ;;  %1851 = vmatprep.subr.mxu1 %v3790_v56 }
0x1299   :  { %1729 = vmatpush1.msra.mxu0 %v3807_v42  ;;  %1852 = vmatpush1.msra.mxu1 %v3795_v58 }
0x129a   :  { %2788 = vmatmul.mubr.msk.f32.gmra.mxu0 %vm421_vm3, %v1362_v10  ;;  %2796 = vmatmul.mubr.msk.f32.gmra.mxu1 %vm421_vm3, %v1362_v10 }
0x129b   :  { %1505 = vmatprep.mubr.f32.mxu0 %v3195_v0  ;;  %1650 = vmatprep.mubr.f32.mxu1 %v3195_v0 }
0x129c   :  { %1730 = vmatprep.subr.mxu0 %v3814_v44  ;;  %1853 = vmatprep.subr.mxu1 %v3802_v9 }
0x129d   :  { %1731 = vmatpush1.msra.mxu0 %v3819_v39  ;;  %1854 = vmatpush1.msra.mxu1 %v3807_v42 }
0x129e   :  { %2789 = vmatmul.mubr.msk.f32.gmra.mxu0 %vm421_vm3, %v1363_v11  ;;  %2797 = vmatmul.mubr.msk.f32.gmra.mxu1 %vm421_vm3, %v1363_v11 }
0x129f   :  { %1511 = vmatprep.mubr.f32.mxu0 %v3195_v0  ;;  %1656 = vmatprep.mubr.f32.mxu1 %v3195_v0 }
0x12a0   :  { %1732 = vmatprep.subr.mxu0 %v3826_v32  ;;  %1855 = vmatprep.subr.mxu1 %v3814_v44 }
0x12a1   :  { %1733 = vmatpush1.msra.mxu0 %v3831_v12  ;;  %1856 = vmatpush1.msra.mxu1 %v3819_v39 }
0x12a2   :  { %2790 = vmatmul.mubr.msk.f32.gmra.mxu0 %vm421_vm3, %v1364_v13  ;;  %2798 = vmatmul.mubr.msk.f32.gmra.mxu1 %vm421_vm3, %v1364_v13 }
0x12a3   :  { %1766 = vmatprep.mubr.f32.mxu0 %v3195_v0  ;;  %1857 = vmatprep.subr.mxu1 %v3826_v32 }
0x12a4   :  { %1858 = vmatpush1.msra.mxu1 %v3831_v12  ;;  %1891 = vmatprep.mubr.f32.mxu1 %v3195_v0 }
0x12a5   :  { %1957 = vmatprep.subr.mxu0 %v3741_v6  ;;  %2071 = vmatprep.subr.mxu1 %v3741_v6 }
0x12a6   :  { %1767 = vmatmul.mubr.f32.vlgmr.msra.gmra.mxu0 %v3195_v0 }
0x12a7   :  { %1958 = vmatpush1.msra.mxu0 %v3753_v35  ;;  %2005 = vmatprep.mubr.f32.mxu0 %v3195_v0 }
0x12a8   :  { %1959 = vmatprep.subr.mxu0 %v3755_v14 }
0x12a9   :  { %1960 = vmatpush1.msra.mxu0 %v3759_v21 }
0x12aa   :  { %1961 = vmatprep.subr.mxu0 %v3766_v59 }
0x12ab   :  { %1962 = vmatpush1.msra.mxu0 %v3771_v48 }
0x12ac   :  { %1963 = vmatprep.subr.mxu0 %v3778_v51 }
0x12ad   :  { %1964 = vmatpush1.msra.mxu0 %v3783_v53 }
0x12ae   :  { %1965 = vmatprep.subr.mxu0 %v3790_v56 }
0x12af   :  { %1966 = vmatpush1.msra.mxu0 %v3795_v58 }
0x12b0   :  { %1967 = vmatprep.subr.mxu0 %v3802_v9 }
0x12b1   :  { %1968 = vmatpush1.msra.mxu0 %v3807_v42 }
0x12b2   :  { %1969 = vmatprep.subr.mxu0 %v3814_v44 }
0x12b3   :  { %1970 = vmatpush1.msra.mxu0 %v3819_v39 }
0x12b4   :  { %1971 = vmatprep.subr.mxu0 %v3826_v32 }
0x12b5   :  { %1972 = vmatpush1.msra.mxu0 %v3831_v12 }
0x12b6   :  { %2185 = vmatprep.subr.mxu0 %v3741_v6 }
0x1346   :  { %v1471_v16 = vpop.f32.mrf.mxu0  ;;  %v1616_v17 = vpop.f32.mrf.mxu1 }
0x1348   :  { %v1473_v18 = vpop.f32.mrf.mxu0  ;;  %v1618_v19 = vpop.f32.mrf.mxu1 }
0x134a   :  { %v1477_v22 = vpop.f32.mrf.mxu0  ;;  %v1622_v23 = vpop.f32.mrf.mxu1 }
0x134c   :  { %v1479_v24 = vpop.f32.mrf.mxu0  ;;  %v1624_v25 = vpop.f32.mrf.mxu1 }
0x134e   :  { %v1483_v27 = vpop.f32.mrf.mxu0  ;;  %v1628_v28 = vpop.f32.mrf.mxu1 }
0x1350   :  { %v1485_v52 = vpop.f32.mrf.mxu0  ;;  %v1630_v54 = vpop.f32.mrf.mxu1 }
0x1352   :  { %v1489_v60 = vpop.f32.mrf.mxu0  ;;  %v1634_v8 = vpop.f32.mrf.mxu1 }
0x1354   :  { %v1491_v63 = vpop.f32.mrf.mxu0  ;;  %v1636_v2 = vpop.f32.mrf.mxu1 }
0x1356   :  { %v1495_v62 = vpop.f32.mrf.mxu0  ;;  %v1640_v1 = vpop.f32.mrf.mxu1 }
0x1357   :  { %v3865_v4 = vadd.f32 %v1634_v8, %v1495_v62  ;;  %v3867_v5 = vadd.f32 %v1640_v1, %v1489_v60 }
0x1358   :  { %v1497_v7 = vpop.f32.mrf.mxu0  ;;  %v1642_v20 = vpop.f32.mrf.mxu1 }
0x1359   :  { %v3869_v29 = vadd.f32 %v1636_v2, %v1497_v7  ;;  %v3871_v30 = vadd.f32 %v1642_v20, %v1491_v63 }
0x135a   :  { %v1501_v31 = vpop.f32.mrf.mxu0  ;;  %v1646_v33 = vpop.f32.mrf.mxu1 }
0x135b   :  { %v3873_v34 = vadd.f32 %v1628_v28, %v1501_v31  ;;  %v3875_v36 = vadd.f32 %v1646_v33, %v1483_v27 }
0x135c   :  { %v1503_v3 = vpop.f32.mrf.mxu0  ;;  %v1648_v37 = vpop.f32.mrf.mxu1 }
0x135d   :  { %v3877_v47 = vadd.f32 %v1630_v54, %v1503_v3  ;;  %v3879_v49 = vadd.f32 %v1648_v37, %v1485_v52 }
0x135e   :  { %v1507_v38 = vpop.f32.mrf.mxu0  ;;  %v1652_v40 = vpop.f32.mrf.mxu1 }
0x135f   :  { %v3881_v43 = vadd.f32 %v1622_v23, %v1507_v38  ;;  %v3883_v46 = vadd.f32 %v1652_v40, %v1477_v22  ;;  %v1695_v22 = vld [vmem:[%s4140_s8] sm:$0x3] }
0x1360   :  { %v1509_v57 = vpop.f32.mrf.mxu0  ;;  %v1654_v50 = vpop.f32.mrf.mxu1 }
0x1361   :  { %v3885_v55 = vadd.f32 %v1624_v25, %v1509_v57  ;;  %v3887_v61 = vadd.f32 %v1654_v50, %v1479_v24  ;;  %v3898_v24 = vrot.slane %v1695_v22, %v505_v26 }
0x1362   :  { %v1513_v10 = vpop.f32.mrf.mxu0  ;;  %v1658_v11 = vpop.f32.mrf.mxu1 }
0x1363   :  { %v3889_v13 = vadd.f32 %v1616_v17, %v1513_v10  ;;  %v1700_v27 = vadd.f32 %v1658_v11, %v1471_v16 }
0x1364   :  { %v1515_v28 = vpop.f32.mrf.mxu0  ;;  %v1660_v52 = vpop.f32.mrf.mxu1 }
0x1365   :  { %v3891_v54 = vadd.f32 %v1618_v19, %v1515_v28  ;;  %v1701_v60 = vadd.f32 %v1660_v52, %v1473_v18  ;;  %v3904_v19 = vrot.slane %v1695_v22, %v501_v45 }
0x1366   :  { %v1768_v23 = vpop.f32.mrf.mxu0 }
0x1367   :  { %v1773_v8 = vadd.f32 %v1768_v23, %v1700_v27 }
0x1368   :  { %v1770_v25 = vpop.f32.mrf.mxu0 }
0x1369   :  { %v1774_v63 = vadd.f32 %v1770_v25, %v1701_v60  ;;  %v1786_v2 = vadd.f32 %v3904_v19, %v1773_v8 }
0x136b   :  { %v1787_v17 = vadd.f32 %v3898_v24, %v1774_v63  ;;  %v2799_v18 = vmul.f32 -1.442695, %v1786_v2 }
0x136d   :  { %2984 = vtanh.f32 %v1787_v17  ;;  %v2800_v15 = vmul.f32 -1.442695, %v1787_v17 }
0x136e   :  { %2986 = vpow2.f32 %v2799_v18 }
0x137a   :  { %v2985_v16 = vpop.eup %2984 }
0x137b   :  { %1803 = vrot.lane.b32.xlu0 %v2985_v16, %s3196_s0  ;;  %v2987_v62 = vpop.eup %2986 }
0x137c   :  { %v1794_v1 = vadd.f32 1.0, %v2987_v62 }
0x137e   :  { %2988 = vrcp.f32 %v1794_v1 }
0x138b   :  { %v2989_v26 = vpop.eup %2988 }
0x138c   :  { %v1801_v31 = vmul.f32 0.0, %v2989_v26 }
0x13ed   :  { %v1804_v7 = vpop.permute.xlu0 %1803 }
0x13ee   :  { %v1806_v20 = vmul.f32 %v2989_v26, %v1804_v7 }
0x13f0   :  { %1808 = vrot.lane.b32.xlu1 %v1806_v20, %s3196_s0 }
0x1462   :  { %v1809_v33 = vpop.permute.xlu1 %1808 }
0x1463   :  { %v1811_v3 = vadd.f32 %v1809_v33, %v1801_v31 }
0x1465   :  { %2990 = vtanh.f32 %v1811_v3 }
0x1466   :  { %2992 = vpow2.f32 %v2800_v15 }
0x1472   :  { %v2991_v37 = vpop.eup %2990 }
0x1473   :  { %1814 = vrot.lane.b32.xlu0 %v2991_v37, %s3196_s0  ;;  %v2993_v45 = vpop.eup %2992 }
0x1474   :  { %v1795_v38 = vadd.f32 1.0, %v2993_v45 }
0x1476   :  { %2994 = vrcp.f32 %v1795_v38 }
0x1483   :  { %v2995_v40 = vpop.eup %2994 }
0x14e5   :  { %v1815_v57 = vpop.permute.xlu0 %1814 }
0x14e6   :  { %v1817_v50 = vmul.f32 %v2995_v40, %v1815_v57 }
0x14e8   :  { %2801 = vmatmul.mubr.msk.f32.vlgmr.msra.gmra.mxu1 %vm421_vm3, %v1817_v50 }
0x14e9   :  { %2072 = vmatpush1.msra.mxu1 %v3753_v35  ;;  %2119 = vmatprep.mubr.f32.mxu1 %v3195_v0 }
0x14ea   :  { %2073 = vmatprep.subr.mxu1 %v3755_v14 }
0x14eb   :  { %2074 = vmatpush1.msra.mxu1 %v3759_v21 }
0x14ec   :  { %2075 = vmatprep.subr.mxu1 %v3766_v59 }
0x14ed   :  { %2076 = vmatpush1.msra.mxu1 %v3771_v48 }
0x14ee   :  { %2077 = vmatprep.subr.mxu1 %v3778_v51 }
0x14ef   :  { %2078 = vmatpush1.msra.mxu1 %v3783_v53 }
0x14f0   :  { %2079 = vmatprep.subr.mxu1 %v3790_v56 }
0x14f1   :  { %2080 = vmatpush1.msra.mxu1 %v3795_v58 }
0x14f2   :  { %2081 = vmatprep.subr.mxu1 %v3802_v9 }
0x14f3   :  { %2082 = vmatpush1.msra.mxu1 %v3807_v42 }
0x14f4   :  { %2083 = vmatprep.subr.mxu1 %v3814_v44 }
0x14f5   :  { %2084 = vmatpush1.msra.mxu1 %v3819_v39 }
0x14f6   :  { %2085 = vmatprep.subr.mxu1 %v3826_v32 }
0x14f7   :  { %2086 = vmatpush1.msra.mxu1 %v3831_v12 }
0x14f8   :  { %2299 = vmatprep.subr.mxu1 %v3741_v6 }
0x15a8   :  { %v1893_v10 = vpop.f32.mrf.mxu1 }
0x15a9   :  { %v1898_v11 = vadd.f32 %v1893_v10, %v3883_v46 }
0x15aa   :  { %v1895_v27 = vpop.f32.mrf.mxu1 }
0x15ab   :  { %v1899_v28 = vadd.f32 %v1895_v27, %v3887_v61  ;;  %v1900_v23 = vadd.f32 %v1898_v11, %v3904_v19 }
0x15ad   :  { %v1901_v52 = vadd.f32 %v1899_v28, %v3898_v24  ;;  %v2802_v60 = vmul.f32 -1.442695, %v1900_v23 }
0x15af   :  { %2996 = vtanh.f32 %v1901_v52  ;;  %v2803_v62 = vmul.f32 -1.442695, %v1901_v52 }
0x15b0   :  { %2998 = vpow2.f32 %v2802_v60 }
0x15bc   :  { %v2997_v22 = vpop.eup %2996 }
0x15bd   :  { %1917 = vrot.lane.b32.xlu1 %v2997_v22, %s3196_s0  ;;  %v2999_v8 = vpop.eup %2998 }
0x15be   :  { %v1908_v25 = vadd.f32 1.0, %v2999_v8 }
0x15c0   :  { %3000 = vrcp.f32 %v1908_v25 }
0x15cd   :  { %v3001_v63 = vpop.eup %3000 }
0x15ce   :  { %v1915_v46 = vmul.f32 %v3001_v63, %v1811_v3 }
0x162f   :  { %v1918_v17 = vpop.permute.xlu1 %1917 }
0x1630   :  { %v1920_v16 = vmul.f32 %v3001_v63, %v1918_v17 }
0x1632   :  { %1922 = vrot.lane.b32.xlu0 %v1920_v16, %s3196_s0 }
0x16a4   :  { %v1923_v61 = vpop.permute.xlu0 %1922 }
0x16a5   :  { %v1925_v2 = vadd.f32 %v1923_v61, %v1915_v46 }
0x16a7   :  { %3002 = vtanh.f32 %v1925_v2 }
0x16a8   :  { %3004 = vpow2.f32 %v2803_v62 }
0x16b4   :  { %v3003_v18 = vpop.eup %3002 }
0x16b5   :  { %1928 = vrot.lane.b32.xlu1 %v3003_v18, %s3196_s0  ;;  %v3005_v1 = vpop.eup %3004 }
0x16b6   :  { %v1909_v26 = vadd.f32 1.0, %v3005_v1 }
0x16b8   :  { %3006 = vrcp.f32 %v1909_v26 }
0x16c5   :  { %v3007_v7 = vpop.eup %3006 }
0x1727   :  { %v1929_v20 = vpop.permute.xlu1 %1928 }
0x1728   :  { %v1931_v31 = vmul.f32 %v3007_v7, %v1929_v20 }
0x172a   :  { %2804 = vmatmul.mubr.msk.f32.vlgmr.msra.gmra.mxu0 %vm421_vm3, %v1931_v31 }
0x172b   :  { %2186 = vmatpush1.msra.mxu0 %v3753_v35  ;;  %2233 = vmatprep.mubr.f32.mxu0 %v3195_v0 }
0x172c   :  { %2187 = vmatprep.subr.mxu0 %v3755_v14 }
0x172d   :  { %2188 = vmatpush1.msra.mxu0 %v3759_v21 }
0x172e   :  { %2189 = vmatprep.subr.mxu0 %v3766_v59 }
0x172f   :  { %2190 = vmatpush1.msra.mxu0 %v3771_v48 }
0x1730   :  { %2191 = vmatprep.subr.mxu0 %v3778_v51 }
0x1731   :  { %2192 = vmatpush1.msra.mxu0 %v3783_v53 }
0x1732   :  { %2193 = vmatprep.subr.mxu0 %v3790_v56 }
0x1733   :  { %2194 = vmatpush1.msra.mxu0 %v3795_v58 }
0x1734   :  { %2195 = vmatprep.subr.mxu0 %v3802_v9 }
0x1735   :  { %2196 = vmatpush1.msra.mxu0 %v3807_v42 }
0x1736   :  { %2197 = vmatprep.subr.mxu0 %v3814_v44 }
0x1737   :  { %2198 = vmatpush1.msra.mxu0 %v3819_v39 }
0x1738   :  { %2199 = vmatprep.subr.mxu0 %v3826_v32 }
0x1739   :  { %2200 = vmatpush1.msra.mxu0 %v3831_v12 }
0x173a   :  { %2413 = vmatprep.subr.mxu0 %v3741_v6 }
0x17ea   :  { %v2007_v33 = vpop.f32.mrf.mxu0 }
0x17eb   :  { %v2012_v3 = vadd.f32 %v2007_v33, %v3875_v36 }
0x17ec   :  { %v2009_v37 = vpop.f32.mrf.mxu0 }
0x17ed   :  { %v2013_v15 = vadd.f32 %v2009_v37, %v3879_v49  ;;  %v2014_v40 = vadd.f32 %v2012_v3, %v3904_v19 }
0x17ef   :  { %v2015_v45 = vadd.f32 %v2013_v15, %v3898_v24  ;;  %v2805_v57 = vmul.f32 -1.442695, %v2014_v40 }
0x17f1   :  { %3008 = vtanh.f32 %v2015_v45  ;;  %v2806_v23 = vmul.f32 -1.442695, %v2015_v45 }
0x17f2   :  { %3010 = vpow2.f32 %v2805_v57 }
0x17fe   :  { %v3009_v38 = vpop.eup %3008 }
0x17ff   :  { %2031 = vrot.lane.b32.xlu0 %v3009_v38, %s3196_s0  ;;  %v3011_v50 = vpop.eup %3010 }
0x1800   :  { %v2022_v10 = vadd.f32 1.0, %v3011_v50 }
0x1802   :  { %3012 = vrcp.f32 %v2022_v10 }
0x180f   :  { %v3013_v11 = vpop.eup %3012 }
0x1810   :  { %v2029_v36 = vmul.f32 %v3013_v11, %v1925_v2 }
0x1871   :  { %v2032_v27 = vpop.permute.xlu0 %2031 }
0x1872   :  { %v2034_v28 = vmul.f32 %v3013_v11, %v2032_v27 }
0x1874   :  { %2036 = vrot.lane.b32.xlu1 %v2034_v28, %s3196_s0 }
0x18e6   :  { %v2037_v49 = vpop.permute.xlu1 %2036 }
0x18e7   :  { %v2039_v52 = vadd.f32 %v2037_v49, %v2029_v36 }
0x18e9   :  { %3014 = vtanh.f32 %v2039_v52 }
0x18ea   :  { %3016 = vpow2.f32 %v2806_v23 }
0x18f6   :  { %v3015_v22 = vpop.eup %3014 }
0x18f7   :  { %2042 = vrot.lane.b32.xlu0 %v3015_v22, %s3196_s0  ;;  %v3017_v60 = vpop.eup %3016 }
0x18f8   :  { %v2023_v8 = vadd.f32 1.0, %v3017_v60 }
0x18fa   :  { %3018 = vrcp.f32 %v2023_v8 }
0x1907   :  { %v3019_v25 = vpop.eup %3018 }
0x1969   :  { %v2043_v63 = vpop.permute.xlu0 %2042 }
0x196a   :  { %v2045_v17 = vmul.f32 %v3019_v25, %v2043_v63 }
0x196c   :  { %2807 = vmatmul.mubr.msk.f32.vlgmr.msra.gmra.mxu1 %vm421_vm3, %v2045_v17 }
0x196d   :  { %2300 = vmatpush1.msra.mxu1 %v3753_v35  ;;  %2347 = vmatprep.mubr.f32.mxu1 %v3195_v0 }
0x196e   :  { %2301 = vmatprep.subr.mxu1 %v3755_v14 }
0x196f   :  { %2302 = vmatpush1.msra.mxu1 %v3759_v21 }
0x1970   :  { %2303 = vmatprep.subr.mxu1 %v3766_v59 }
0x1971   :  { %2304 = vmatpush1.msra.mxu1 %v3771_v48 }
0x1972   :  { %2305 = vmatprep.subr.mxu1 %v3778_v51 }
0x1973   :  { %2306 = vmatpush1.msra.mxu1 %v3783_v53 }
0x1974   :  { %2307 = vmatprep.subr.mxu1 %v3790_v56 }
0x1975   :  { %2308 = vmatpush1.msra.mxu1 %v3795_v58 }
0x1976   :  { %2309 = vmatprep.subr.mxu1 %v3802_v9 }
0x1977   :  { %2310 = vmatpush1.msra.mxu1 %v3807_v42 }
0x1978   :  { %2311 = vmatprep.subr.mxu1 %v3814_v44 }
0x1979   :  { %2312 = vmatpush1.msra.mxu1 %v3819_v39 }
0x197a   :  { %2313 = vmatprep.subr.mxu1 %v3826_v32 }
0x197b   :  { %2314 = vmatpush1.msra.mxu1 %v3831_v12 }
0x197c   :  { %2527 = vmatprep.subr.mxu1 %v3741_v6 }
0x1a2c   :  { %v2121_v16 = vpop.f32.mrf.mxu1 }
0x1a2d   :  { %v2126_v46 = vadd.f32 %v2121_v16, %v3867_v5 }
0x1a2e   :  { %v2123_v61 = vpop.f32.mrf.mxu1 }
0x1a2f   :  { %v2127_v2 = vadd.f32 %v2123_v61, %v3871_v30  ;;  %v2128_v1 = vadd.f32 %v2126_v46, %v3904_v19 }
0x1a31   :  { %v2129_v18 = vadd.f32 %v2127_v2, %v3898_v24  ;;  %v2808_v26 = vmul.f32 -1.442695, %v2128_v1 }
0x1a33   :  { %3020 = vtanh.f32 %v2129_v18  ;;  %v2809_v15 = vmul.f32 -1.442695, %v2129_v18 }
0x1a34   :  { %3022 = vpow2.f32 %v2808_v26 }
0x1a40   :  { %v3021_v62 = vpop.eup %3020 }
0x1a41   :  { %2145 = vrot.lane.b32.xlu1 %v3021_v62, %s3196_s0  ;;  %v3023_v7 = vpop.eup %3022 }
0x1a42   :  { %v2136_v20 = vadd.f32 1.0, %v3023_v7 }
0x1a44   :  { %3024 = vrcp.f32 %v2136_v20 }
0x1a51   :  { %v3025_v6 = vpop.eup %3024 }
0x1a52   :  { %v2143_v5 = vmul.f32 %v3025_v6, %v2039_v52 }
0x1ab3   :  { %v2146_v31 = vpop.permute.xlu1 %2145 }
0x1ab4   :  { %v2148_v33 = vmul.f32 %v3025_v6, %v2146_v31 }
0x1ab6   :  { %2150 = vrot.lane.b32.xlu0 %v2148_v33, %s3196_s0 }
0x1b28   :  { %v2151_v30 = vpop.permute.xlu0 %2150 }
0x1b29   :  { %v2153_v3 = vadd.f32 %v2151_v30, %v2143_v5 }
0x1b2b   :  { %3026 = vtanh.f32 %v2153_v3 }
0x1b2c   :  { %3028 = vpow2.f32 %v2809_v15 }
0x1b38   :  { %v3027_v37 = vpop.eup %3026 }
0x1b39   :  { %2156 = vrot.lane.b32.xlu1 %v3027_v37, %s3196_s0  ;;  %v3029_v45 = vpop.eup %3028 }
0x1b3a   :  { %v2137_v38 = vadd.f32 1.0, %v3029_v45 }
0x1b3c   :  { %3030 = vrcp.f32 %v2137_v38 }
0x1b49   :  { %v3031_v40 = vpop.eup %3030 }
0x1bab   :  { %v2157_v57 = vpop.permute.xlu1 %2156 }
0x1bac   :  { %v2159_v50 = vmul.f32 %v3031_v40, %v2157_v57 }
0x1bae   :  { %2810 = vmatmul.mubr.msk.f32.vlgmr.msra.gmra.mxu0 %vm421_vm3, %v2159_v50 }
0x1baf   :  { %2414 = vmatpush1.msra.mxu0 %v3753_v35  ;;  %2461 = vmatprep.mubr.f32.mxu0 %v3195_v0 }
0x1bb0   :  { %2415 = vmatprep.subr.mxu0 %v3755_v14 }
0x1bb1   :  { %2416 = vmatpush1.msra.mxu0 %v3759_v21 }
0x1bb2   :  { %2417 = vmatprep.subr.mxu0 %v3766_v59 }
0x1bb3   :  { %2418 = vmatpush1.msra.mxu0 %v3771_v48 }
0x1bb4   :  { %2419 = vmatprep.subr.mxu0 %v3778_v51 }
0x1bb5   :  { %2420 = vmatpush1.msra.mxu0 %v3783_v53 }
0x1bb6   :  { %2421 = vmatprep.subr.mxu0 %v3790_v56 }
0x1bb7   :  { %2422 = vmatpush1.msra.mxu0 %v3795_v58 }
0x1bb8   :  { %2423 = vmatprep.subr.mxu0 %v3802_v9 }
0x1bb9   :  { %2424 = vmatpush1.msra.mxu0 %v3807_v42 }
0x1bba   :  { %2425 = vmatprep.subr.mxu0 %v3814_v44 }
0x1bbb   :  { %2426 = vmatpush1.msra.mxu0 %v3819_v39 }
0x1bbc   :  { %2427 = vmatprep.subr.mxu0 %v3826_v32 }
0x1bbd   :  { %2428 = vmatpush1.msra.mxu0 %v3831_v12 }
0x1bbe   :  { %2840 = vmatprep.subr.mxu0 %v3195_v0 }
0x1c6e   :  { %v2235_v10 = vpop.f32.mrf.mxu0 }
0x1c6f   :  { %v2240_v11 = vadd.f32 %v2235_v10, %v3865_v4 }
0x1c70   :  { %v2237_v27 = vpop.f32.mrf.mxu0 }
0x1c71   :  { %v2241_v28 = vadd.f32 %v2237_v27, %v3869_v29  ;;  %v2242_v52 = vadd.f32 %v2240_v11, %v3904_v19 }
0x1c73   :  { %v2243_v36 = vadd.f32 %v2241_v28, %v3898_v24  ;;  %v2811_v22 = vmul.f32 -1.442695, %v2242_v52 }
0x1c75   :  { %3032 = vtanh.f32 %v2243_v36  ;;  %v2812_v46 = vmul.f32 -1.442695, %v2243_v36 }
0x1c76   :  { %3034 = vpow2.f32 %v2811_v22 }
0x1c82   :  { %v3033_v49 = vpop.eup %3032 }
0x1c83   :  { %2259 = vrot.lane.b32.xlu0 %v3033_v49, %s3196_s0  ;;  %v3035_v23 = vpop.eup %3034 }
0x1c84   :  { %v2250_v60 = vadd.f32 1.0, %v3035_v23 }
0x1c86   :  { %3036 = vrcp.f32 %v2250_v60 }
0x1c93   :  { %v3037_v8 = vpop.eup %3036 }
0x1c94   :  { %v2257_v4 = vmul.f32 %v3037_v8, %v2153_v3 }
0x1cf5   :  { %v2260_v25 = vpop.permute.xlu0 %2259 }
0x1cf6   :  { %v2262_v63 = vmul.f32 %v3037_v8, %v2260_v25 }
0x1cf8   :  { %2264 = vrot.lane.b32.xlu1 %v2262_v63, %s3196_s0 }
0x1d6a   :  { %v2265_v29 = vpop.permute.xlu1 %2264 }
0x1d6b   :  { %v2267_v17 = vadd.f32 %v2265_v29, %v2257_v4 }
0x1d6d   :  { %3038 = vtanh.f32 %v2267_v17 }
0x1d6e   :  { %3040 = vpow2.f32 %v2812_v46 }
0x1d7a   :  { %v3039_v16 = vpop.eup %3038 }
0x1d7b   :  { %2270 = vrot.lane.b32.xlu0 %v3039_v16, %s3196_s0  ;;  %v3041_v61 = vpop.eup %3040 }
0x1d7c   :  { %v2251_v2 = vadd.f32 1.0, %v3041_v61 }
0x1d7e   :  { %3042 = vrcp.f32 %v2251_v2 }
0x1d8b   :  { %v3043_v18 = vpop.eup %3042 }
0x1ded   :  { %v2271_v62 = vpop.permute.xlu0 %2270 }
0x1dee   :  { %v2273_v1 = vmul.f32 %v3043_v18, %v2271_v62 }
0x1df0   :  { %2813 = vmatmul.mubr.msk.f32.vlgmr.msra.gmra.mxu1 %vm421_vm3, %v2273_v1 }
0x1df1   :  { %2528 = vmatpush1.msra.mxu1 %v3753_v35  ;;  %2575 = vmatprep.mubr.f32.mxu1 %v3195_v0 }
0x1df2   :  { %2529 = vmatprep.subr.mxu1 %v3755_v14 }
0x1df3   :  { %2530 = vmatpush1.msra.mxu1 %v3759_v21 }
0x1df4   :  { %2531 = vmatprep.subr.mxu1 %v3766_v59 }
0x1df5   :  { %2532 = vmatpush1.msra.mxu1 %v3771_v48 }
0x1df6   :  { %2533 = vmatprep.subr.mxu1 %v3778_v51 }
0x1df7   :  { %2534 = vmatpush1.msra.mxu1 %v3783_v53 }
0x1df8   :  { %2535 = vmatprep.subr.mxu1 %v3790_v56 }
0x1df9   :  { %2536 = vmatpush1.msra.mxu1 %v3795_v58 }
0x1dfa   :  { %2537 = vmatprep.subr.mxu1 %v3802_v9 }
0x1dfb   :  { %2538 = vmatpush1.msra.mxu1 %v3807_v42 }
0x1dfc   :  { %2539 = vmatprep.subr.mxu1 %v3814_v44 }
0x1dfd   :  { %2540 = vmatpush1.msra.mxu1 %v3819_v39 }
0x1dfe   :  { %2541 = vmatprep.subr.mxu1 %v3826_v32 }
0x1dff   :  { %2542 = vmatpush1.msra.mxu1 %v3831_v12 }
0x1eb0   :  { %v2349_v35 = vpop.f32.mrf.mxu1 }
0x1eb1   :  { %v2354_v14 = vadd.f32 %v2349_v35, %v3873_v34 }
0x1eb2   :  { %v2351_v21 = vpop.f32.mrf.mxu1 }
0x1eb3   :  { %v2355_v59 = vadd.f32 %v2351_v21, %v3877_v47  ;;  %v2356_v53 = vadd.f32 %v2354_v14, %v3904_v19  ;;  %v2636_v14 = vld [vmem:[%s4141_s9 + $0x78] sm:$0xff]  ;;  %v2634_v21 = vld [vmem:[%s4141_s9 + $0x68] sm:$0xff] }
0x1eb5   :  { %v2357_v48 = vadd.f32 %v2355_v59, %v3898_v24  ;;  %v2814_v56 = vmul.f32 -1.442695, %v2356_v53  ;;  %v2633_v59 = vld [vmem:[%s4141_s9 + $0x60] sm:$0xff] }
0x1eb7   :  { %3044 = vtanh.f32 %v2357_v48  ;;  %v2815_v26 = vmul.f32 -1.442695, %v2357_v48  ;;  %v2632_v48 = vld [vmem:[%s4141_s9 + $0x58] sm:$0xff] }
0x1eb8   :  { %3046 = vpow2.f32 %v2814_v56  ;;  %v2630_v56 = vld [vmem:[%s4141_s9 + $0x48] sm:$0xff] }
0x1ec4   :  { %v3045_v51 = vpop.eup %3044 }
0x1ec5   :  { %2373 = vrot.lane.b32.xlu1 %v3045_v51, %s3196_s0  ;;  %v3047_v58 = vpop.eup %3046  ;;  %v2631_v51 = vld [vmem:[%s4141_s9 + $0x50] sm:$0xff] }
0x1ec6   :  { %v2364_v9 = vadd.f32 1.0, %v3047_v58  ;;  %v2629_v58 = vld [vmem:[%s4141_s9 + $0x40] sm:$0xff] }
0x1ec8   :  { %3048 = vrcp.f32 %v2364_v9  ;;  %v2628_v9 = vld [vmem:[%s4141_s9 + $0x38] sm:$0xff] }
0x1ed5   :  { %v3049_v42 = vpop.eup %3048 }
0x1ed6   :  { %v2371_v32 = vmul.f32 %v3049_v42, %v2267_v17 }
0x1f37   :  { %v2374_v44 = vpop.permute.xlu1 %2373 }
0x1f38   :  { %v2376_v39 = vmul.f32 %v3049_v42, %v2374_v44  ;;  %v2627_v42 = vld [vmem:[%s4141_s9 + $0x30] sm:$0xff]  ;;  %v2626_v44 = vld [vmem:[%s4141_s9 + $0x28] sm:$0xff] }
0x1f3a   :  { %2378 = vrot.lane.b32.xlu0 %v2376_v39, %s3196_s0  ;;  %v2625_v39 = vld [vmem:[%s4141_s9 + $0x20] sm:$0xff] }
0x1fac   :  { %v2379_v12 = vpop.permute.xlu0 %2378 }
0x1fad   :  { %v2381_v34 = vadd.f32 %v2379_v12, %v2371_v32  ;;  %v2624_v32 = vld [vmem:[%s4141_s9 + $0x18] sm:$0xff]  ;;  %v2623_v12 = vld [vmem:[%s4141_s9 + $0x10] sm:$0xff] }
0x1faf   :  { %3050 = vtanh.f32 %v2381_v34 }
0x1fb0   :  { %3052 = vpow2.f32 %v2815_v26 }
0x1fbc   :  { %v3051_v47 = vpop.eup %3050 }
0x1fbd   :  { %2384 = vrot.lane.b32.xlu1 %v3051_v47, %s3196_s0  ;;  %v3053_v7 = vpop.eup %3052 }
0x1fbe   :  { %v2365_v20 = vadd.f32 1.0, %v3053_v7 }
0x1fc0   :  { %3054 = vrcp.f32 %v2365_v20  ;;  %v2621_v20 = vld [vmem:[%s4141_s9] sm:$0xff] }
0x1fcd   :  { %v3055_v6 = vpop.eup %3054 }
0x202f   :  { %v2385_v31 = vpop.permute.xlu1 %2384 }
0x2030   :  { %v2387_v33 = vmul.f32 %v3055_v6, %v2385_v31  ;;  %v2717_v6 = vld [vmem:[%s4143_s11] sm:$0xff]  ;;  %s3198_s11 = smov 112  }
0x2032   :  { %2816 = vmatmul.mubr.msk.f32.vlgmr.msra.gmra.mxu0 %vm421_vm3, %v2387_v33 }
0x2033   :  { %2841 = vmatpush3.msra.mxu0 %v2636_v14  ;;  %2872 = vmatprep.mubr.msk.f32.mxu0 %vm3197_vm4, %v3195_v0 }
0x2034   :  { %2842 = vmatprep.subr.mxu0 %v3195_v0 }
0x20f2   :  { %v2463_v5 = vpop.f32.mrf.mxu0 }
0x20f3   :  { %v2468_v30 = vadd.f32 %v2463_v5, %v3881_v43 }
0x20f4   :  { %v2465_v3 = vpop.f32.mrf.mxu0 }
0x20f5   :  { %v2469_v37 = vadd.f32 %v2465_v3, %v3885_v55  ;;  %v2470_v38 = vadd.f32 %v2468_v30, %v3904_v19 }
0x20f7   :  { %v2471_v15 = vadd.f32 %v2469_v37, %v3898_v24  ;;  %v2817_v40 = vmul.f32 -1.442695, %v2470_v38 }
0x20f9   :  { %3056 = vtanh.f32 %v2471_v15  ;;  %v2818_v49 = vmul.f32 -1.442695, %v2471_v15 }
0x20fa   :  { %3058 = vpow2.f32 %v2817_v40 }
0x2106   :  { %v3057_v45 = vpop.eup %3056 }
0x2107   :  { %2487 = vrot.lane.b32.xlu0 %v3057_v45, %s3196_s0  ;;  %v3059_v57 = vpop.eup %3058 }
0x2108   :  { %v2478_v50 = vadd.f32 1.0, %v3059_v57 }
0x210a   :  { %3060 = vrcp.f32 %v2478_v50 }
0x2117   :  { %v3061_v10 = vpop.eup %3060 }
0x2118   :  { %v2485_v43 = vmul.f32 %v3061_v10, %v2381_v34  ;;  %v2622_v34 = vld [vmem:[%s4141_s9 + $0x8] sm:$0xff] }
0x2179   :  { %v2488_v11 = vpop.permute.xlu0 %2487 }
0x217a   :  { %v2490_v27 = vmul.f32 %v3061_v10, %v2488_v11 }
0x217c   :  { %2492 = vrot.lane.b32.xlu1 %v2490_v27, %s3196_s0 }
0x21ee   :  { %v2493_v55 = vpop.permute.xlu1 %2492 }
0x21ef   :  { %v2495_v28 = vadd.f32 %v2493_v55, %v2485_v43 }
0x21f1   :  { %3062 = vtanh.f32 %v2495_v28 }
0x21f2   :  { %3064 = vpow2.f32 %v2818_v49 }
0x21fe   :  { %v3063_v36 = vpop.eup %3062 }
0x21ff   :  { %2498 = vrot.lane.b32.xlu0 %v3063_v36, %s3196_s0  ;;  %v3065_v52 = vpop.eup %3064 }
0x2200   :  { %v2479_v22 = vadd.f32 1.0, %v3065_v52 }
0x2202   :  { %3066 = vrcp.f32 %v2479_v22 }
0x220f   :  { %v3067_v23 = vpop.eup %3066 }
0x2271   :  { %v2499_v60 = vpop.permute.xlu0 %2498 }
0x2272   :  { %v2501_v8 = vmul.f32 %v3067_v23, %v2499_v60 }
0x2274   :  { %2819 = vmatmul.mubr.msk.f32.vlgmr.msra.gmra.mxu1 %vm421_vm3, %v2501_v8 }
0x2334   :  { %v2577_v25 = vpop.f32.mrf.mxu1 }
0x2335   :  { %v2582_v63 = vadd.f32 %v2577_v25, %v3889_v13 }
0x2336   :  { %v2579_v4 = vpop.f32.mrf.mxu1 }
0x2337   :  { %v2583_v29 = vadd.f32 %v2579_v4, %v3891_v54  ;;  %v2584_v46 = vadd.f32 %v2582_v63, %v3904_v19  ;;  %v2635_v19 = vld [vmem:[%s4141_s9 + $0x70] sm:$0xff] }
0x2338   :  { %2843 = vmatpush3.msra.mxu0 %v2635_v19 }
0x2339   :  { %v4045_v17 = vadd.f32 %v2583_v29, %v3898_v24  ;;  %v2820_v61 = vmul.f32 -1.442695, %v2584_v46  ;;  %2844 = vmatprep.subr.mxu0 %v3195_v0 }
0x233a   :  { %2845 = vmatpush3.msra.mxu0 %v2634_v21 }
0x233b   :  { %3068 = vtanh.f32 %v4045_v17  ;;  %2846 = vmatprep.subr.mxu0 %v3195_v0  ;;  %v2821_v47 = vmul.f32 -1.442695, %v4045_v17 }
0x233c   :  { %3070 = vpow2.f32 %v2820_v61  ;;  %2847 = vmatpush3.msra.mxu0 %v2633_v59 }
0x233d   :  { %2848 = vmatprep.subr.mxu0 %v3195_v0 }
0x233e   :  { %2849 = vmatpush3.msra.mxu0 %v2632_v48 }
0x233f   :  { %2850 = vmatprep.subr.mxu0 %v3195_v0 }
0x2340   :  { %2851 = vmatpush3.msra.mxu0 %v2631_v51 }
0x2341   :  { %2852 = vmatprep.subr.mxu0 %v3195_v0 }
0x2342   :  { %2853 = vmatpush3.msra.mxu0 %v2630_v56 }
0x2343   :  { %2854 = vmatprep.subr.mxu0 %v3195_v0 }
0x2344   :  { %2855 = vmatpush3.msra.mxu0 %v2629_v58 }
0x2345   :  { %2856 = vmatprep.subr.mxu0 %v3195_v0 }
0x2346   :  { %2857 = vmatpush3.msra.mxu0 %v2628_v9 }
0x2347   :  { %2858 = vmatprep.subr.mxu0 %v3195_v0 }
0x2348   :  { %v3069_v16 = vpop.eup %3068  ;;  %2859 = vmatpush3.msra.mxu0 %v2627_v42 }
0x2349   :  { %2601 = vrot.lane.b32.xlu1 %v3069_v16, %s3196_s0  ;;  %v3071_v2 = vpop.eup %3070  ;;  %2860 = vmatprep.subr.mxu0 %v3195_v0 }
0x234a   :  { %v2592_v18 = vadd.f32 1.0, %v3071_v2  ;;  %2861 = vmatpush3.msra.mxu0 %v2626_v44 }
0x234b   :  { %2862 = vmatprep.subr.mxu0 %v3195_v0 }
0x234c   :  { %3072 = vrcp.f32 %v2592_v18  ;;  %2863 = vmatpush3.msra.mxu0 %v2625_v39 }
0x234d   :  { %2864 = vmatprep.subr.mxu0 %v3195_v0 }
0x234e   :  { %2865 = vmatpush3.msra.mxu0 %v2624_v32 }
0x234f   :  { %2866 = vmatprep.subr.mxu0 %v3195_v0 }
0x2350   :  { %2867 = vmatpush3.msra.mxu0 %v2623_v12 }
0x2351   :  { %2868 = vmatprep.subr.mxu0 %v3195_v0 }
0x2352   :  { %2869 = vmatpush3.msra.mxu0 %v2622_v34 }
0x2353   :  { %2870 = vmatprep.subr.mxu0 %v3195_v0  ;;  %v2822_v0 = vld [vmem:[%s4142_s10] ss:$0 sm:$0xff] }
0x2354   :  { %2871 = vmatpush3.msra.mxu0 %v2621_v20 }
0x2359   :  { %v3073_v62 = vpop.eup %3072 }
0x235a   :  { %v2599_v54 = vmul.f32 %v3073_v62, %v2495_v28 }
0x23bb   :  { %v2602_v13 = vpop.permute.xlu1 %2601 }
0x23bc   :  { %v2604_v1 = vmul.f32 %v3073_v62, %v2602_v13 }
0x23be   :  { %2606 = vrot.lane.b32.xlu0 %v2604_v1, %s3196_s0 }
0x2430   :  { %v2607_v24 = vpop.permute.xlu0 %2606 }
0x2431   :  { %v2609_v35 = vadd.f32 %v2607_v24, %v2599_v54 }
0x2433   :  { %3074 = vtanh.f32 %v2609_v35 }
0x2434   :  { %3076 = vpow2.f32 %v2821_v47 }
0x2440   :  { %v3075_v53 = vpop.eup %3074 }
0x2441   :  { %2612 = vrot.lane.b32.xlu1 %v3075_v53, %s3196_s0  ;;  %v3077_v26 = vpop.eup %3076 }
0x2442   :  { %v2593_v7 = vadd.f32 1.0, %v3077_v26 }
0x2444   :  { %3078 = vrcp.f32 %v2593_v7 }
0x2445   :  { %2719 = vrot.lane.b32.xlu1 %v2717_v6, %s3191_s30 }
0x2451   :  { %v3079_v31 = vpop.eup %3078 }
0x24b3   :  { %v2613_v33 = vpop.permute.xlu1 %2612 }
0x24b4   :  { %v2615_v5 = vmul.f32 %v3079_v31, %v2613_v33 }
0x24b6   :  { %2617 = vrot.lane.b32.xlu0 %v2615_v5, %s3196_s0 }
0x24b7   :  { %v2720_v57 = vpop.permute.xlu1 %2719 }
0x2528   :  { %v2618_v30 = vpop.permute.xlu0 %2617 }
0x2529   :  { %v2620_v3 = vsel %vm421_vm3, %v3747_v41, %v2618_v30 }
0x252a   :  { %2873 = vmatmul.mubr.f32.vlgmr.msra.gmra.mxu0 %v2620_v3 }
0x25ea   :  { %v2710_v37 = vpop.f32.mrf.mxu0 }
0x25eb   :  { %v2711_v15 = vadd.f32 %v2822_v0, %v2710_v37 }
0x25ec   :  { %v2874_v45 = vpop.f32.mrf.mxu0 }
0x25ed   :  { %v2714_v38 = vmul.f32 0.5, %v2711_v15  ;;  %2729 = vrot.lane.b32.xlu1 %v2711_v15, %s3191_s30 }
0x25ef   :  { %v2715_v40 = vmul.f32 1.442695, %v2714_v38 }
0x25f1   :  { %3080 = vpow2.f32 %v2715_v40 }
0x25fe   :  { %v3081_v50 = vpop.eup %3080 }
0x25ff   :  { %v2722_v10 = vmul.f32 %v3081_v50, %v2720_v57 }
0x2601   :  { %2724 = vrot.lane.b32.xlu0 %v2722_v10, %s3198_s11 }
0x265f   :  { %v2730_v27 = vpop.permute.xlu1 %2729 }
0x2673   :  { %v2725_v41 = vpop.permute.xlu0 %2724 }
0x2674   :  { %v2727_v11 = vadd.f32 %v2725_v41, %v2711_v15 }
0x2676   :  { %v2733_v43 = vsel %vm2732_vm5, %v2727_v11, %v2730_v27 }
0x2677   :  { %v2734_v55 = vsel %vm541_vm1, %v2733_v43, %v2730_v27 }
0x2678   :  { %2736 = vst.msk [vmem:[%s4144_s12] sm:$0xff] %vm2735_vm6, %v2734_v55 }
0x2679   :  { %2741 = vsyncpa [#allocation6], 1 }
0x267a   :  { %2742 = vsyncpa [#allocation8], 1 }
0x267b   :  { %2743 = vsyncpa [#allocation11], 1 }

</bundles_post_ra>
